<compile_context>
chip_gen: v7x
topology: tpu7x:2x2x1
jax: 0.10.0
libtpu: 0.0.40
codegen_flags: <defaults>
</compile_context>

<pallas_src>
import jax
import jax.numpy as jnp
from jax.experimental import pallas as pl
from jax.experimental.pallas import tpu as pltpu

LANE = 128


def _rup(n, m=LANE):
    return ((n + m - 1) // m) * m


def _silu(x):
    return x * jax.nn.sigmoid(x)


# ----------------------------------------------------------------------------
# Kernel
# ----------------------------------------------------------------------------
def vae_kernel(x_ref, eps_ref, w_ref, b_ref,
               recon_ref, z_ref, mean_ref, logvar_ref):
    """9 bf16 MXU matmuls with f32 accumulation; elementwise math in f32
    (correct on every generation).
    TODO(synk): on v6e/v7x the sigmoid/SiLU activations could run in bf16 for
                extra EUP/VPU throughput; kept f32 for v5e compatibility."""

    def dense(a_bf16, i):
        return jnp.dot(a_bf16, w_ref[i],
                       preferred_element_type=jnp.float32) + b_ref[i]

    def bf16(a):
        return a.astype(jnp.bfloat16)

    x = x_ref[...]                                    # already bf16

    # ----------------- encoder -----------------
    h = jnp.maximum(dense(x, 0), 0.0)                 # Linear + ReLU
    h = jax.nn.sigmoid(dense(bf16(h), 1))             # Linear + Sigmoid
    h = _silu(dense(bf16(h), 2))                      # Linear + SiLU
    hb = bf16(h)
    mean = dense(hb, 3)                               # split head: no odd-lane
    logvar = dense(hb, 4)                             #   slicing anywhere

    # ----------------- reparameterize (f32) -----------------
    std = jnp.exp(0.5 * logvar)
    z = mean + eps_ref[...] * std

    # ----------------- decoder -----------------
    d = jnp.maximum(dense(bf16(z), 5), 0.0)           # Linear + ReLU
    d = jax.nn.sigmoid(dense(bf16(d), 6))             # Linear + Sigmoid
    d = _silu(dense(bf16(d), 7))                      # Linear + SiLU
    d = jax.nn.sigmoid(dense(bf16(d), 8))             # Linear + Sigmoid

    # Leading-lane slices are 128-multiples -> plain (un-relayouted) stores.
    recon_ref[...] = d[:, :recon_ref.shape[-1]].astype(recon_ref.dtype)
    z_ref[...] = z[:, :z_ref.shape[-1]].astype(z_ref.dtype)
    mean_ref[...] = mean[:, :mean_ref.shape[-1]].astype(mean_ref.dtype)
    logvar_ref[...] = logvar[:, :logvar_ref.shape[-1]].astype(logvar_ref.dtype)


# ----------------------------------------------------------------------------
# Parameter packing
# ----------------------------------------------------------------------------
def prepare_params(params, input_dim, hidden_dim, latent_dim):
    """Split the encoder head into mean/logvar halves, zero-pad every weight to
    (D, D) and every bias to (1, D) with D = 128-roundup of the widest feature
    dim, then stack: weights -> (9, D, D) bf16 (MXU), biases -> (9, 1, D) f32."""
    D = _rup(max(input_dim, hidden_dim, 2 * hidden_dim, latent_dim))
    ew4, eb4 = params["ew4"], params["eb4"]
    w_list = [params["ew1"], params["ew2"], params["ew3"],
              ew4[:, :latent_dim], ew4[:, latent_dim:],
              params["dw1"], params["dw2"], params["dw3"], params["dw4"]]
    b_list = [params["eb1"], params["eb2"], params["eb3"],
              eb4[:, :latent_dim], eb4[:, latent_dim:],
              params["db1"], params["db2"], params["db3"], params["db4"]]
    w_pack = jnp.stack([
        jnp.pad(w, ((0, D - w.shape[0]), (0, D - w.shape[1]))) for w in w_list
    ]).astype(jnp.bfloat16)
    b_pack = jnp.stack([
        jnp.pad(b, ((0, 0), (0, D - b.shape[1]))) for b in b_list
    ]).astype(jnp.float32)
    return {"w": w_pack, "b": b_pack}


# ----------------------------------------------------------------------------
# Wrapper
# ----------------------------------------------------------------------------
def _vmem_limit_bytes():
    # Generation-aware: at most half of physical VMEM, capped at 64 MiB.
    # (v5e/v6e: 128 MiB physical -> 64 MiB; v7x: 64 MiB physical -> 32 MiB.)
    try:
        cap = pltpu.get_tpu_info().vmem_capacity_bytes
    except Exception:
        cap = 128 * 1024 * 1024
    return int(min(64 * 1024 * 1024, cap // 2))


def vae_forward(x, eps, kparams, *, input_dim, latent_dim, block_batch=None):
    """Full VAE forward in one fused Pallas kernel.

    x:   [B, input_dim]  float32 (cast to bf16 + padded here)
    eps: [B, latent_dim] float32 reparameterization noise
    Returns (recon, z, mean, logvar) matching the PyTorch module.
    """
    w_pack = kparams["w"]                  # (9, D, D) bf16
    b_pack = kparams["b"]                  # (9, 1, D) f32
    D = int(w_pack.shape[-1])
    d_in = _rup(input_dim)
    d_lat = _rup(latent_dim)

    B = x.shape[0]
    b8 = _rup(B, 8)                        # sublane-align (never raise)
    if block_batch is not None:
        bm = int(block_batch)
    elif b8 <= 2048:
        bm = b8                            # one grid step: no per-step overhead
    else:
        bm = 1024                          # big tiles; "parallel" -> megacore
    bp = _rup(b8, bm)
    grid = bp // bm

    x_p = jnp.pad(x.astype(jnp.bfloat16), ((0, bp - B), (0, D - input_dim)))
    eps_p = jnp.pad(eps.astype(jnp.float32), ((0, bp - B), (0, D - latent_dim)))

    out_shape = (
        jax.ShapeDtypeStruct((bp, d_in), jnp.float32),    # recon (padded)
        jax.ShapeDtypeStruct((bp, d_lat), jnp.float32),   # z
        jax.ShapeDtypeStruct((bp, d_lat), jnp.float32),   # mean
        jax.ShapeDtypeStruct((bp, d_lat), jnp.float32),   # logvar
    )

    # Advisory cost estimate for the XLA scheduler.
    cost = pl.CostEstimate(
        flops=int(2 * bp * 9 * D * D),
        transcendentals=int(7 * bp * D),
        bytes_accessed=int(x_p.size * x_p.dtype.itemsize + eps_p.size * 4
                           + w_pack.size * w_pack.dtype.itemsize
                           + b_pack.size * 4
                           + 4 * bp * (d_in + 3 * d_lat)))

    def build(single_buffer_weights):
        if single_buffer_weights and hasattr(pl, "Buffered"):
            # Constant index_map across the grid -> no point double-buffering.
            const_spec = lambda a: pl.BlockSpec(
                a.shape, lambda i: (0,) * a.ndim, pipeline_mode=pl.Buffered(1))
        else:
            const_spec = lambda a: pl.BlockSpec(a.shape, lambda i: (0,) * a.ndim)
        in_specs = [pl.BlockSpec((bm, D), lambda i: (i, 0)),       # x (bf16)
                    pl.BlockSpec((bm, D), lambda i: (i, 0)),       # eps (f32)
                    const_spec(w_pack), const_spec(b_pack)]
        out_specs = [pl.BlockSpec((bm, d_in), lambda i: (i, 0)),
                     pl.BlockSpec((bm, d_lat), lambda i: (i, 0)),
                     pl.BlockSpec((bm, d_lat), lambda i: (i, 0)),
                     pl.BlockSpec((bm, d_lat), lambda i: (i, 0))]
        return pl.pallas_call(
            vae_kernel,
            out_shape=out_shape,
            grid=(grid,),
            in_specs=in_specs,
            out_specs=out_specs,
            compiler_params=pltpu.CompilerParams(
                dimension_semantics=("parallel",),
                vmem_limit_bytes=_vmem_limit_bytes()),
            cost_estimate=cost,
        )

    try:
        outs = build(True)(x_p, eps_p, w_pack, b_pack)
    except Exception:
        # TODO(synk): pl.Buffered(1) rejected on this jax version; fall back to
        # default (double-buffered) weight specs — costs 2x weight VMEM only.
        outs = build(False)(x_p, eps_p, w_pack, b_pack)

    recon_p, z_p, mean_p, logvar_p = outs
    return (recon_p[:B, :input_dim], z_p[:B, :latent_dim],
            mean_p[:B, :latent_dim], logvar_p[:B, :latent_dim])


# ----------------------------------------------------------------------------
# Init + pure-JAX reference
# ----------------------------------------------------------------------------
def init_params(key, input_dim, hidden_dim, latent_dim):
    """Deterministic init in the natural layout: Linear(i, o) stored as
    W:(in, out) (pre-transposed) and b:(1, out), all float32."""
    dims_enc = [(input_dim, hidden_dim), (hidden_dim, 2 * hidden_dim),
                (2 * hidden_dim, hidden_dim), (hidden_dim, 2 * latent_dim)]
    dims_dec = [(latent_dim, hidden_dim), (hidden_dim, 2 * hidden_dim),
                (2 * hidden_dim, hidden_dim), (hidden_dim, input_dim)]
    params = {}
    keys = jax.random.split(key, 16)
    k = 0
    for prefix, dims in (("e", dims_enc), ("d", dims_dec)):
        for li, (di, do) in enumerate(dims, start=1):
            bound = 1.0 / jnp.sqrt(di)
            params[f"{prefix}w{li}"] = jax.random.uniform(
                keys[k], (di, do), jnp.float32, -bound, bound)
            k += 1
            params[f"{prefix}b{li}"] = jax.random.uniform(
                keys[k], (1, do), jnp.float32, -bound, bound)
            k += 1
    return params


def vae_reference(x, eps, params, latent_dim):
    """Pure-JAX f32 reference (faithful to the PyTorch module)."""
    h = jnp.maximum(x @ params["ew1"] + params["eb1"], 0.0)
    h = jax.nn.sigmoid(h @ params["ew2"] + params["eb2"])
    h = _silu(h @ params["ew3"] + params["eb3"])
    h = h @ params["ew4"] + params["eb4"]
    mean, logvar = h[:, :latent_dim], h[:, latent_dim:]
    std = jnp.exp(0.5 * logvar)
    z = mean + eps * std
    d = jnp.maximum(z @ params["dw1"] + params["db1"], 0.0)
    d = jax.nn.sigmoid(d @ params["dw2"] + params["db2"])
    d = _silu(d @ params["dw3"] + params["db3"])
    d = jax.nn.sigmoid(d @ params["dw4"] + params["db4"])
    return d, z, mean, logvar


if __name__ == "__main__":
    input_dim, hidden_dim, latent_dim = 64, 32, 16
    batch = 16   # padded batch fits one grid step

    key = jax.random.PRNGKey(0)
    k_x, k_eps, k_params = jax.random.split(key, 3)

    x = jax.random.normal(k_x, (batch, input_dim), jnp.float32)
    # TODO(synk): torch.randn_like inside forward() has no in-kernel analogue
    # here; eps is generated with jax.random and passed in for determinism.
    eps = jax.random.normal(k_eps, (batch, latent_dim), jnp.float32)
    params = init_params(k_params, input_dim, hidden_dim, latent_dim)
    kparams = prepare_params(params, input_dim, hidden_dim, latent_dim)

    recon, z, mean, logvar = jax.block_until_ready(
        vae_forward(x, eps, kparams, input_dim=input_dim, latent_dim=latent_dim))

    # sanity-check against the f32 reference (kernel matmuls are bf16 -> loose tol)
    r_recon, r_z, r_mean, r_logvar = vae_reference(x, eps, params, latent_dim)
    assert recon.shape == (batch, input_dim) and z.shape == (batch, latent_dim)
    assert mean.shape == (batch, latent_dim) and logvar.shape == (batch, latent_dim)
    assert jnp.allclose(recon, r_recon, atol=3e-2, rtol=3e-2)
    assert jnp.allclose(z, r_z, atol=3e-2, rtol=3e-2)
    assert jnp.allclose(mean, r_mean, atol=3e-2, rtol=3e-2)
    assert jnp.allclose(logvar, r_logvar, atol=3e-2, rtol=3e-2)

    print("KERNEL_OK")
</pallas_src>

<mosaic_0001>
module attributes {stable_mosaic.version = 11 : i64} {
  func.func @vae_kernel(%arg0: i32, %arg1: memref<16x128xbf16, #tpu.memory_space<vmem>>, %arg2: memref<16x128xf32, #tpu.memory_space<vmem>>, %arg3: memref<9x128x128xbf16, #tpu.memory_space<vmem>>, %arg4: memref<9x1x128xf32, #tpu.memory_space<vmem>>, %arg5: memref<16x128xf32, #tpu.memory_space<vmem>>, %arg6: memref<16x128xf32, #tpu.memory_space<vmem>>, %arg7: memref<16x128xf32, #tpu.memory_space<vmem>>, %arg8: memref<16x128xf32, #tpu.memory_space<vmem>>) attributes {dimension_semantics = [#tpu.dimension_semantics<parallel>], iteration_bounds = array<i64: 1>, scalar_prefetch = 0 : i64, scratch_operands = 0 : i64, tpu.core_type = #tpu.core_type<tc>, window_params = [{transform_indices = @transform_0, window_bounds = array<i64: 16, 128>}, {transform_indices = @transform_1, window_bounds = array<i64: 16, 128>}, {pipeline_mode = #tpu.pipeline_mode<synchronous>, transform_indices = @transform_2, window_bounds = array<i64: 9, 128, 128>}, {pipeline_mode = #tpu.pipeline_mode<synchronous>, transform_indices = @transform_3, window_bounds = array<i64: 9, 1, 128>}, {transform_indices = @transform_4, window_bounds = array<i64: 16, 128>}, {transform_indices = @transform_5, window_bounds = array<i64: 16, 128>}, {transform_indices = @transform_6, window_bounds = array<i64: 16, 128>}, {transform_indices = @transform_7, window_bounds = array<i64: 16, 128>}]} {
    %c0 = arith.constant 0 : index
    %c0_0 = arith.constant 0 : index
    %0 = vector.load %arg1[%c0, %c0_0] : memref<16x128xbf16, #tpu.memory_space<vmem>>, vector<16x128xbf16>
    %c0_1 = arith.constant 0 : index
    %c0_2 = arith.constant 0 : index
    %c0_3 = arith.constant 0 : index
    %1 = vector.load %arg3[%c0_1, %c0_2, %c0_3] : memref<9x128x128xbf16, #tpu.memory_space<vmem>>, vector<1x128x128xbf16>
    %2 = vector.shape_cast %1 : vector<1x128x128xbf16> to vector<128x128xbf16>
    %cst = arith.constant dense<0.000000e+00> : vector<16x128xf32>
    %3 = tpu.matmul %0, %2, %cst {dimension_numbers = #tpu.dot_dimension_numbers<[1], [0], [0], [1], [0, 0, 1, 1], [], []>} : vector<16x128xbf16>, vector<128x128xbf16>, vector<16x128xf32> -> vector<16x128xf32>
    %c0_4 = arith.constant 0 : index
    %c0_5 = arith.constant 0 : index
    %c0_6 = arith.constant 0 : index
    %4 = vector.load %arg4[%c0_4, %c0_5, %c0_6] : memref<9x1x128xf32, #tpu.memory_space<vmem>>, vector<1x1x128xf32>
    %5 = vector.shape_cast %4 : vector<1x1x128xf32> to vector<1x128xf32>
    %6 = vector.broadcast %5 : vector<1x128xf32> to vector<16x128xf32>
    %7 = arith.addf %3, %6 : vector<16x128xf32>
    %cst_7 = arith.constant 0.000000e+00 : f32
    %8 = vector.broadcast %cst_7 : f32 to vector<16x128xf32>
    %9 = arith.maximumf %7, %8 : vector<16x128xf32>
    %10 = arith.truncf %9 : vector<16x128xf32> to vector<16x128xbf16>
    %c1 = arith.constant 1 : index
    %c0_8 = arith.constant 0 : index
    %c0_9 = arith.constant 0 : index
    %11 = vector.load %arg3[%c1, %c0_8, %c0_9] : memref<9x128x128xbf16, #tpu.memory_space<vmem>>, vector<1x128x128xbf16>
    %12 = vector.shape_cast %11 : vector<1x128x128xbf16> to vector<128x128xbf16>
    %cst_10 = arith.constant dense<0.000000e+00> : vector<16x128xf32>
    %13 = tpu.matmul %10, %12, %cst_10 {dimension_numbers = #tpu.dot_dimension_numbers<[1], [0], [0], [1], [0, 0, 1, 1], [], []>} : vector<16x128xbf16>, vector<128x128xbf16>, vector<16x128xf32> -> vector<16x128xf32>
    %c1_11 = arith.constant 1 : index
    %c0_12 = arith.constant 0 : index
    %c0_13 = arith.constant 0 : index
    %14 = vector.load %arg4[%c1_11, %c0_12, %c0_13] : memref<9x1x128xf32, #tpu.memory_space<vmem>>, vector<1x1x128xf32>
    %15 = vector.shape_cast %14 : vector<1x1x128xf32> to vector<1x128xf32>
    %16 = vector.broadcast %15 : vector<1x128xf32> to vector<16x128xf32>
    %17 = arith.addf %13, %16 : vector<16x128xf32>
    %18 = arith.negf %17 : vector<16x128xf32>
    %19 = math.exp %18 : vector<16x128xf32>
    %cst_14 = arith.constant 1.000000e+00 : f32
    %20 = vector.broadcast %cst_14 : f32 to vector<16x128xf32>
    %21 = arith.addf %20, %19 : vector<16x128xf32>
    %22 = arith.divf %20, %21 : vector<16x128xf32>
    %23 = arith.truncf %22 : vector<16x128xf32> to vector<16x128xbf16>
    %c2 = arith.constant 2 : index
    %c0_15 = arith.constant 0 : index
    %c0_16 = arith.constant 0 : index
    %24 = vector.load %arg3[%c2, %c0_15, %c0_16] : memref<9x128x128xbf16, #tpu.memory_space<vmem>>, vector<1x128x128xbf16>
    %25 = vector.shape_cast %24 : vector<1x128x128xbf16> to vector<128x128xbf16>
    %cst_17 = arith.constant dense<0.000000e+00> : vector<16x128xf32>
    %26 = tpu.matmul %23, %25, %cst_17 {dimension_numbers = #tpu.dot_dimension_numbers<[1], [0], [0], [1], [0, 0, 1, 1], [], []>} : vector<16x128xbf16>, vector<128x128xbf16>, vector<16x128xf32> -> vector<16x128xf32>
    %c2_18 = arith.constant 2 : index
    %c0_19 = arith.constant 0 : index
    %c0_20 = arith.constant 0 : index
    %27 = vector.load %arg4[%c2_18, %c0_19, %c0_20] : memref<9x1x128xf32, #tpu.memory_space<vmem>>, vector<1x1x128xf32>
    %28 = vector.shape_cast %27 : vector<1x1x128xf32> to vector<1x128xf32>
    %29 = vector.broadcast %28 : vector<1x128xf32> to vector<16x128xf32>
    %30 = arith.addf %26, %29 : vector<16x128xf32>
    %31 = arith.negf %30 : vector<16x128xf32>
    %32 = math.exp %31 : vector<16x128xf32>
    %cst_21 = arith.constant 1.000000e+00 : f32
    %33 = vector.broadcast %cst_21 : f32 to vector<16x128xf32>
    %34 = arith.addf %33, %32 : vector<16x128xf32>
    %35 = arith.divf %33, %34 : vector<16x128xf32>
    %36 = arith.mulf %30, %35 : vector<16x128xf32>
    %37 = arith.truncf %36 : vector<16x128xf32> to vector<16x128xbf16>
    %c3 = arith.constant 3 : index
    %c0_22 = arith.constant 0 : index
    %c0_23 = arith.constant 0 : index
    %38 = vector.load %arg3[%c3, %c0_22, %c0_23] : memref<9x128x128xbf16, #tpu.memory_space<vmem>>, vector<1x128x128xbf16>
    %39 = vector.shape_cast %38 : vector<1x128x128xbf16> to vector<128x128xbf16>
    %cst_24 = arith.constant dense<0.000000e+00> : vector<16x128xf32>
    %40 = tpu.matmul %37, %39, %cst_24 {dimension_numbers = #tpu.dot_dimension_numbers<[1], [0], [0], [1], [0, 0, 1, 1], [], []>} : vector<16x128xbf16>, vector<128x128xbf16>, vector<16x128xf32> -> vector<16x128xf32>
    %c3_25 = arith.constant 3 : index
    %c0_26 = arith.constant 0 : index
    %c0_27 = arith.constant 0 : index
    %41 = vector.load %arg4[%c3_25, %c0_26, %c0_27] : memref<9x1x128xf32, #tpu.memory_space<vmem>>, vector<1x1x128xf32>
    %42 = vector.shape_cast %41 : vector<1x1x128xf32> to vector<1x128xf32>
    %43 = vector.broadcast %42 : vector<1x128xf32> to vector<16x128xf32>
    %44 = arith.addf %40, %43 : vector<16x128xf32>
    %c4 = arith.constant 4 : index
    %c0_28 = arith.constant 0 : index
    %c0_29 = arith.constant 0 : index
    %45 = vector.load %arg3[%c4, %c0_28, %c0_29] : memref<9x128x128xbf16, #tpu.memory_space<vmem>>, vector<1x128x128xbf16>
    %46 = vector.shape_cast %45 : vector<1x128x128xbf16> to vector<128x128xbf16>
    %cst_30 = arith.constant dense<0.000000e+00> : vector<16x128xf32>
    %47 = tpu.matmul %37, %46, %cst_30 {dimension_numbers = #tpu.dot_dimension_numbers<[1], [0], [0], [1], [0, 0, 1, 1], [], []>} : vector<16x128xbf16>, vector<128x128xbf16>, vector<16x128xf32> -> vector<16x128xf32>
    %c4_31 = arith.constant 4 : index
    %c0_32 = arith.constant 0 : index
    %c0_33 = arith.constant 0 : index
    %48 = vector.load %arg4[%c4_31, %c0_32, %c0_33] : memref<9x1x128xf32, #tpu.memory_space<vmem>>, vector<1x1x128xf32>
    %49 = vector.shape_cast %48 : vector<1x1x128xf32> to vector<1x128xf32>
    %50 = vector.broadcast %49 : vector<1x128xf32> to vector<16x128xf32>
    %51 = arith.addf %47, %50 : vector<16x128xf32>
    %cst_34 = arith.constant 5.000000e-01 : f32
    %52 = vector.broadcast %cst_34 : f32 to vector<16x128xf32>
    %53 = arith.mulf %52, %51 : vector<16x128xf32>
    %54 = math.exp %53 : vector<16x128xf32>
    %c0_35 = arith.constant 0 : index
    %c0_36 = arith.constant 0 : index
    %55 = vector.load %arg2[%c0_35, %c0_36] : memref<16x128xf32, #tpu.memory_space<vmem>>, vector<16x128xf32>
    %56 = arith.mulf %55, %54 : vector<16x128xf32>
    %57 = arith.addf %44, %56 : vector<16x128xf32>
    %58 = arith.truncf %57 : vector<16x128xf32> to vector<16x128xbf16>
    %c5 = arith.constant 5 : index
    %c0_37 = arith.constant 0 : index
    %c0_38 = arith.constant 0 : index
    %59 = vector.load %arg3[%c5, %c0_37, %c0_38] : memref<9x128x128xbf16, #tpu.memory_space<vmem>>, vector<1x128x128xbf16>
    %60 = vector.shape_cast %59 : vector<1x128x128xbf16> to vector<128x128xbf16>
    %cst_39 = arith.constant dense<0.000000e+00> : vector<16x128xf32>
    %61 = tpu.matmul %58, %60, %cst_39 {dimension_numbers = #tpu.dot_dimension_numbers<[1], [0], [0], [1], [0, 0, 1, 1], [], []>} : vector<16x128xbf16>, vector<128x128xbf16>, vector<16x128xf32> -> vector<16x128xf32>
    %c5_40 = arith.constant 5 : index
    %c0_41 = arith.constant 0 : index
    %c0_42 = arith.constant 0 : index
    %62 = vector.load %arg4[%c5_40, %c0_41, %c0_42] : memref<9x1x128xf32, #tpu.memory_space<vmem>>, vector<1x1x128xf32>
    %63 = vector.shape_cast %62 : vector<1x1x128xf32> to vector<1x128xf32>
    %64 = vector.broadcast %63 : vector<1x128xf32> to vector<16x128xf32>
    %65 = arith.addf %61, %64 : vector<16x128xf32>
    %cst_43 = arith.constant 0.000000e+00 : f32
    %66 = vector.broadcast %cst_43 : f32 to vector<16x128xf32>
    %67 = arith.maximumf %65, %66 : vector<16x128xf32>
    %68 = arith.truncf %67 : vector<16x128xf32> to vector<16x128xbf16>
    %c6 = arith.constant 6 : index
    %c0_44 = arith.constant 0 : index
    %c0_45 = arith.constant 0 : index
    %69 = vector.load %arg3[%c6, %c0_44, %c0_45] : memref<9x128x128xbf16, #tpu.memory_space<vmem>>, vector<1x128x128xbf16>
    %70 = vector.shape_cast %69 : vector<1x128x128xbf16> to vector<128x128xbf16>
    %cst_46 = arith.constant dense<0.000000e+00> : vector<16x128xf32>
    %71 = tpu.matmul %68, %70, %cst_46 {dimension_numbers = #tpu.dot_dimension_numbers<[1], [0], [0], [1], [0, 0, 1, 1], [], []>} : vector<16x128xbf16>, vector<128x128xbf16>, vector<16x128xf32> -> vector<16x128xf32>
    %c6_47 = arith.constant 6 : index
    %c0_48 = arith.constant 0 : index
    %c0_49 = arith.constant 0 : index
    %72 = vector.load %arg4[%c6_47, %c0_48, %c0_49] : memref<9x1x128xf32, #tpu.memory_space<vmem>>, vector<1x1x128xf32>
    %73 = vector.shape_cast %72 : vector<1x1x128xf32> to vector<1x128xf32>
    %74 = vector.broadcast %73 : vector<1x128xf32> to vector<16x128xf32>
    %75 = arith.addf %71, %74 : vector<16x128xf32>
    %76 = arith.negf %75 : vector<16x128xf32>
    %77 = math.exp %76 : vector<16x128xf32>
    %cst_50 = arith.constant 1.000000e+00 : f32
    %78 = vector.broadcast %cst_50 : f32 to vector<16x128xf32>
    %79 = arith.addf %78, %77 : vector<16x128xf32>
    %80 = arith.divf %78, %79 : vector<16x128xf32>
    %81 = arith.truncf %80 : vector<16x128xf32> to vector<16x128xbf16>
    %c7 = arith.constant 7 : index
    %c0_51 = arith.constant 0 : index
    %c0_52 = arith.constant 0 : index
    %82 = vector.load %arg3[%c7, %c0_51, %c0_52] : memref<9x128x128xbf16, #tpu.memory_space<vmem>>, vector<1x128x128xbf16>
    %83 = vector.shape_cast %82 : vector<1x128x128xbf16> to vector<128x128xbf16>
    %cst_53 = arith.constant dense<0.000000e+00> : vector<16x128xf32>
    %84 = tpu.matmul %81, %83, %cst_53 {dimension_numbers = #tpu.dot_dimension_numbers<[1], [0], [0], [1], [0, 0, 1, 1], [], []>} : vector<16x128xbf16>, vector<128x128xbf16>, vector<16x128xf32> -> vector<16x128xf32>
    %c7_54 = arith.constant 7 : index
    %c0_55 = arith.constant 0 : index
    %c0_56 = arith.constant 0 : index
    %85 = vector.load %arg4[%c7_54, %c0_55, %c0_56] : memref<9x1x128xf32, #tpu.memory_space<vmem>>, vector<1x1x128xf32>
    %86 = vector.shape_cast %85 : vector<1x1x128xf32> to vector<1x128xf32>
    %87 = vector.broadcast %86 : vector<1x128xf32> to vector<16x128xf32>
    %88 = arith.addf %84, %87 : vector<16x128xf32>
    %89 = arith.negf %88 : vector<16x128xf32>
    %90 = math.exp %89 : vector<16x128xf32>
    %cst_57 = arith.constant 1.000000e+00 : f32
    %91 = vector.broadcast %cst_57 : f32 to vector<16x128xf32>
    %92 = arith.addf %91, %90 : vector<16x128xf32>
    %93 = arith.divf %91, %92 : vector<16x128xf32>
    %94 = arith.mulf %88, %93 : vector<16x128xf32>
    %95 = arith.truncf %94 : vector<16x128xf32> to vector<16x128xbf16>
    %c8 = arith.constant 8 : index
    %c0_58 = arith.constant 0 : index
    %c0_59 = arith.constant 0 : index
    %96 = vector.load %arg3[%c8, %c0_58, %c0_59] : memref<9x128x128xbf16, #tpu.memory_space<vmem>>, vector<1x128x128xbf16>
    %97 = vector.shape_cast %96 : vector<1x128x128xbf16> to vector<128x128xbf16>
    %cst_60 = arith.constant dense<0.000000e+00> : vector<16x128xf32>
    %98 = tpu.matmul %95, %97, %cst_60 {dimension_numbers = #tpu.dot_dimension_numbers<[1], [0], [0], [1], [0, 0, 1, 1], [], []>} : vector<16x128xbf16>, vector<128x128xbf16>, vector<16x128xf32> -> vector<16x128xf32>
    %c8_61 = arith.constant 8 : index
    %c0_62 = arith.constant 0 : index
    %c0_63 = arith.constant 0 : index
    %99 = vector.load %arg4[%c8_61, %c0_62, %c0_63] : memref<9x1x128xf32, #tpu.memory_space<vmem>>, vector<1x1x128xf32>
    %100 = vector.shape_cast %99 : vector<1x1x128xf32> to vector<1x128xf32>
    %101 = vector.broadcast %100 : vector<1x128xf32> to vector<16x128xf32>
    %102 = arith.addf %98, %101 : vector<16x128xf32>
    %103 = arith.negf %102 : vector<16x128xf32>
    %104 = math.exp %103 : vector<16x128xf32>
    %cst_64 = arith.constant 1.000000e+00 : f32
    %105 = vector.broadcast %cst_64 : f32 to vector<16x128xf32>
    %106 = arith.addf %105, %104 : vector<16x128xf32>
    %107 = arith.divf %105, %106 : vector<16x128xf32>
    %c0_65 = arith.constant 0 : index
    %c0_66 = arith.constant 0 : index
    %108 = vector.load %arg5[%c0_65, %c0_66] : memref<16x128xf32, #tpu.memory_space<vmem>>, vector<16x128xf32>
    tpu.vector_store %arg5[%c0_65, %c0_66], %107 {strides = array<i32>} : memref<16x128xf32, #tpu.memory_space<vmem>>, vector<16x128xf32>,
    %c0_67 = arith.constant 0 : index
    %c0_68 = arith.constant 0 : index
    %109 = vector.load %arg6[%c0_67, %c0_68] : memref<16x128xf32, #tpu.memory_space<vmem>>, vector<16x128xf32>
    tpu.vector_store %arg6[%c0_67, %c0_68], %57 {strides = array<i32>} : memref<16x128xf32, #tpu.memory_space<vmem>>, vector<16x128xf32>,
    %c0_69 = arith.constant 0 : index
    %c0_70 = arith.constant 0 : index
    %110 = vector.load %arg7[%c0_69, %c0_70] : memref<16x128xf32, #tpu.memory_space<vmem>>, vector<16x128xf32>
    tpu.vector_store %arg7[%c0_69, %c0_70], %44 {strides = array<i32>} : memref<16x128xf32, #tpu.memory_space<vmem>>, vector<16x128xf32>,
    %c0_71 = arith.constant 0 : index
    %c0_72 = arith.constant 0 : index
    %111 = vector.load %arg8[%c0_71, %c0_72] : memref<16x128xf32, #tpu.memory_space<vmem>>, vector<16x128xf32>
    tpu.vector_store %arg8[%c0_71, %c0_72], %51 {strides = array<i32>} : memref<16x128xf32, #tpu.memory_space<vmem>>, vector<16x128xf32>,
    return
  }
  func.func @transform_0(%arg0: i32) -> (i32, i32) {
    %c0_i32 = arith.constant 0 : i32
    %c0_i32_0 = arith.constant 0 : i32
    return %arg0, %c0_i32 : i32, i32
  }
  func.func @transform_1(%arg0: i32) -> (i32, i32) {
    %c0_i32 = arith.constant 0 : i32
    %c0_i32_0 = arith.constant 0 : i32
    return %arg0, %c0_i32 : i32, i32
  }
  func.func @transform_2(%arg0: i32) -> (i32, i32, i32) {
    %c0_i32 = arith.constant 0 : i32
    %c0_i32_0 = arith.constant 0 : i32
    %c0_i32_1 = arith.constant 0 : i32
    %c0_i32_2 = arith.constant 0 : i32
    return %c0_i32, %c0_i32_0, %c0_i32_1 : i32, i32, i32
  }
  func.func @transform_3(%arg0: i32) -> (i32, i32, i32) {
    %c0_i32 = arith.constant 0 : i32
    %c0_i32_0 = arith.constant 0 : i32
    %c0_i32_1 = arith.constant 0 : i32
    %c0_i32_2 = arith.constant 0 : i32
    return %c0_i32, %c0_i32_0, %c0_i32_1 : i32, i32, i32
  }
  func.func @transform_4(%arg0: i32) -> (i32, i32) {
    %c0_i32 = arith.constant 0 : i32
    %c0_i32_0 = arith.constant 0 : i32
    return %arg0, %c0_i32 : i32, i32
  }
  func.func @transform_5(%arg0: i32) -> (i32, i32) {
    %c0_i32 = arith.constant 0 : i32
    %c0_i32_0 = arith.constant 0 : i32
    return %arg0, %c0_i32 : i32, i32
  }
  func.func @transform_6(%arg0: i32) -> (i32, i32) {
    %c0_i32 = arith.constant 0 : i32
    %c0_i32_0 = arith.constant 0 : i32
    return %arg0, %c0_i32 : i32, i32
  }
  func.func @transform_7(%arg0: i32) -> (i32, i32) {
    %c0_i32 = arith.constant 0 : i32
    %c0_i32_0 = arith.constant 0 : i32
    return %arg0, %c0_i32 : i32, i32
  }
}

module attributes {stable_mosaic.version = 11 : i64} {
  func.func @vae_kernel(%arg0: i32, %arg1: memref<16x128xbf16, #tpu.memory_space<vmem>>, %arg2: memref<16x128xf32, #tpu.memory_space<vmem>>, %arg3: memref<9x128x128xbf16, #tpu.memory_space<vmem>>, %arg4: memref<9x1x128xf32, #tpu.memory_space<vmem>>, %arg5: memref<16x128xf32, #tpu.memory_space<vmem>>, %arg6: memref<16x128xf32, #tpu.memory_space<vmem>>, %arg7: memref<16x128xf32, #tpu.memory_space<vmem>>, %arg8: memref<16x128xf32, #tpu.memory_space<vmem>>) attributes {dimension_semantics = [#tpu.dimension_semantics<parallel>], iteration_bounds = array<i64: 1>, scalar_prefetch = 0 : i64, scratch_operands = 0 : i64, tpu.core_type = #tpu.core_type<tc>, window_params = [{transform_indices = @transform_0, window_bounds = array<i64: 16, 128>}, {transform_indices = @transform_1, window_bounds = array<i64: 16, 128>}, {pipeline_mode = #tpu.pipeline_mode<synchronous>, transform_indices = @transform_2, window_bounds = array<i64: 9, 128, 128>}, {pipeline_mode = #tpu.pipeline_mode<synchronous>, transform_indices = @transform_3, window_bounds = array<i64: 9, 1, 128>}, {transform_indices = @transform_4, window_bounds = array<i64: 16, 128>}, {transform_indices = @transform_5, window_bounds = array<i64: 16, 128>}, {transform_indices = @transform_6, window_bounds = array<i64: 16, 128>}, {transform_indices = @transform_7, window_bounds = array<i64: 16, 128>}]} {
    %c0 = arith.constant 0 : index
    %c0_0 = arith.constant 0 : index
    %0 = vector.load %arg1[%c0, %c0_0] : memref<16x128xbf16, #tpu.memory_space<vmem>>, vector<16x128xbf16>
    %c0_1 = arith.constant 0 : index
    %c0_2 = arith.constant 0 : index
    %c0_3 = arith.constant 0 : index
    %1 = vector.load %arg3[%c0_1, %c0_2, %c0_3] : memref<9x128x128xbf16, #tpu.memory_space<vmem>>, vector<1x128x128xbf16>
    %2 = vector.shape_cast %1 : vector<1x128x128xbf16> to vector<128x128xbf16>
    %cst = arith.constant dense<0.000000e+00> : vector<16x128xf32>
    %3 = tpu.matmul %0, %2, %cst {dimension_numbers = #tpu.dot_dimension_numbers<[1], [0], [0], [1], [0, 0, 1, 1], [], []>} : vector<16x128xbf16>, vector<128x128xbf16>, vector<16x128xf32> -> vector<16x128xf32>
    %c0_4 = arith.constant 0 : index
    %c0_5 = arith.constant 0 : index
    %c0_6 = arith.constant 0 : index
    %4 = vector.load %arg4[%c0_4, %c0_5, %c0_6] : memref<9x1x128xf32, #tpu.memory_space<vmem>>, vector<1x1x128xf32>
    %5 = vector.shape_cast %4 : vector<1x1x128xf32> to vector<1x128xf32>
    %6 = vector.broadcast %5 : vector<1x128xf32> to vector<16x128xf32>
    %7 = arith.addf %3, %6 : vector<16x128xf32>
    %cst_7 = arith.constant 0.000000e+00 : f32
    %8 = vector.broadcast %cst_7 : f32 to vector<16x128xf32>
    %9 = arith.maximumf %7, %8 : vector<16x128xf32>
    %10 = arith.truncf %9 : vector<16x128xf32> to vector<16x128xbf16>
    %c1 = arith.constant 1 : index
    %c0_8 = arith.constant 0 : index
    %c0_9 = arith.constant 0 : index
    %11 = vector.load %arg3[%c1, %c0_8, %c0_9] : memref<9x128x128xbf16, #tpu.memory_space<vmem>>, vector<1x128x128xbf16>
    %12 = vector.shape_cast %11 : vector<1x128x128xbf16> to vector<128x128xbf16>
    %cst_10 = arith.constant dense<0.000000e+00> : vector<16x128xf32>
    %13 = tpu.matmul %10, %12, %cst_10 {dimension_numbers = #tpu.dot_dimension_numbers<[1], [0], [0], [1], [0, 0, 1, 1], [], []>} : vector<16x128xbf16>, vector<128x128xbf16>, vector<16x128xf32> -> vector<16x128xf32>
    %c1_11 = arith.constant 1 : index
    %c0_12 = arith.constant 0 : index
    %c0_13 = arith.constant 0 : index
    %14 = vector.load %arg4[%c1_11, %c0_12, %c0_13] : memref<9x1x128xf32, #tpu.memory_space<vmem>>, vector<1x1x128xf32>
    %15 = vector.shape_cast %14 : vector<1x1x128xf32> to vector<1x128xf32>
    %16 = vector.broadcast %15 : vector<1x128xf32> to vector<16x128xf32>
    %17 = arith.addf %13, %16 : vector<16x128xf32>
    %18 = arith.negf %17 : vector<16x128xf32>
    %19 = math.exp %18 : vector<16x128xf32>
    %cst_14 = arith.constant 1.000000e+00 : f32
    %20 = vector.broadcast %cst_14 : f32 to vector<16x128xf32>
    %21 = arith.addf %20, %19 : vector<16x128xf32>
    %22 = arith.divf %20, %21 : vector<16x128xf32>
    %23 = arith.truncf %22 : vector<16x128xf32> to vector<16x128xbf16>
    %c2 = arith.constant 2 : index
    %c0_15 = arith.constant 0 : index
    %c0_16 = arith.constant 0 : index
    %24 = vector.load %arg3[%c2, %c0_15, %c0_16] : memref<9x128x128xbf16, #tpu.memory_space<vmem>>, vector<1x128x128xbf16>
    %25 = vector.shape_cast %24 : vector<1x128x128xbf16> to vector<128x128xbf16>
    %cst_17 = arith.constant dense<0.000000e+00> : vector<16x128xf32>
    %26 = tpu.matmul %23, %25, %cst_17 {dimension_numbers = #tpu.dot_dimension_numbers<[1], [0], [0], [1], [0, 0, 1, 1], [], []>} : vector<16x128xbf16>, vector<128x128xbf16>, vector<16x128xf32> -> vector<16x128xf32>
    %c2_18 = arith.constant 2 : index
    %c0_19 = arith.constant 0 : index
    %c0_20 = arith.constant 0 : index
    %27 = vector.load %arg4[%c2_18, %c0_19, %c0_20] : memref<9x1x128xf32, #tpu.memory_space<vmem>>, vector<1x1x128xf32>
    %28 = vector.shape_cast %27 : vector<1x1x128xf32> to vector<1x128xf32>
    %29 = vector.broadcast %28 : vector<1x128xf32> to vector<16x128xf32>
    %30 = arith.addf %26, %29 : vector<16x128xf32>
    %31 = arith.negf %30 : vector<16x128xf32>
    %32 = math.exp %31 : vector<16x128xf32>
    %cst_21 = arith.constant 1.000000e+00 : f32
    %33 = vector.broadcast %cst_21 : f32 to vector<16x128xf32>
    %34 = arith.addf %33, %32 : vector<16x128xf32>
    %35 = arith.divf %33, %34 : vector<16x128xf32>
    %36 = arith.mulf %30, %35 : vector<16x128xf32>
    %37 = arith.truncf %36 : vector<16x128xf32> to vector<16x128xbf16>
    %c3 = arith.constant 3 : index
    %c0_22 = arith.constant 0 : index
    %c0_23 = arith.constant 0 : index
    %38 = vector.load %arg3[%c3, %c0_22, %c0_23] : memref<9x128x128xbf16, #tpu.memory_space<vmem>>, vector<1x128x128xbf16>
    %39 = vector.shape_cast %38 : vector<1x128x128xbf16> to vector<128x128xbf16>
    %cst_24 = arith.constant dense<0.000000e+00> : vector<16x128xf32>
    %40 = tpu.matmul %37, %39, %cst_24 {dimension_numbers = #tpu.dot_dimension_numbers<[1], [0], [0], [1], [0, 0, 1, 1], [], []>} : vector<16x128xbf16>, vector<128x128xbf16>, vector<16x128xf32> -> vector<16x128xf32>
    %c3_25 = arith.constant 3 : index
    %c0_26 = arith.constant 0 : index
    %c0_27 = arith.constant 0 : index
    %41 = vector.load %arg4[%c3_25, %c0_26, %c0_27] : memref<9x1x128xf32, #tpu.memory_space<vmem>>, vector<1x1x128xf32>
    %42 = vector.shape_cast %41 : vector<1x1x128xf32> to vector<1x128xf32>
    %43 = vector.broadcast %42 : vector<1x128xf32> to vector<16x128xf32>
    %44 = arith.addf %40, %43 : vector<16x128xf32>
    %c4 = arith.constant 4 : index
    %c0_28 = arith.constant 0 : index
    %c0_29 = arith.constant 0 : index
    %45 = vector.load %arg3[%c4, %c0_28, %c0_29] : memref<9x128x128xbf16, #tpu.memory_space<vmem>>, vector<1x128x128xbf16>
    %46 = vector.shape_cast %45 : vector<1x128x128xbf16> to vector<128x128xbf16>
    %cst_30 = arith.constant dense<0.000000e+00> : vector<16x128xf32>
    %47 = tpu.matmul %37, %46, %cst_30 {dimension_numbers = #tpu.dot_dimension_numbers<[1], [0], [0], [1], [0, 0, 1, 1], [], []>} : vector<16x128xbf16>, vector<128x128xbf16>, vector<16x128xf32> -> vector<16x128xf32>
    %c4_31 = arith.constant 4 : index
    %c0_32 = arith.constant 0 : index
    %c0_33 = arith.constant 0 : index
    %48 = vector.load %arg4[%c4_31, %c0_32, %c0_33] : memref<9x1x128xf32, #tpu.memory_space<vmem>>, vector<1x1x128xf32>
    %49 = vector.shape_cast %48 : vector<1x1x128xf32> to vector<1x128xf32>
    %50 = vector.broadcast %49 : vector<1x128xf32> to vector<16x128xf32>
    %51 = arith.addf %47, %50 : vector<16x128xf32>
    %cst_34 = arith.constant 5.000000e-01 : f32
    %52 = vector.broadcast %cst_34 : f32 to vector<16x128xf32>
    %53 = arith.mulf %52, %51 : vector<16x128xf32>
    %54 = math.exp %53 : vector<16x128xf32>
    %c0_35 = arith.constant 0 : index
    %c0_36 = arith.constant 0 : index
    %55 = vector.load %arg2[%c0_35, %c0_36] : memref<16x128xf32, #tpu.memory_space<vmem>>, vector<16x128xf32>
    %56 = arith.mulf %55, %54 : vector<16x128xf32>
    %57 = arith.addf %44, %56 : vector<16x128xf32>
    %58 = arith.truncf %57 : vector<16x128xf32> to vector<16x128xbf16>
    %c5 = arith.constant 5 : index
    %c0_37 = arith.constant 0 : index
    %c0_38 = arith.constant 0 : index
    %59 = vector.load %arg3[%c5, %c0_37, %c0_38] : memref<9x128x128xbf16, #tpu.memory_space<vmem>>, vector<1x128x128xbf16>
    %60 = vector.shape_cast %59 : vector<1x128x128xbf16> to vector<128x128xbf16>
    %cst_39 = arith.constant dense<0.000000e+00> : vector<16x128xf32>
    %61 = tpu.matmul %58, %60, %cst_39 {dimension_numbers = #tpu.dot_dimension_numbers<[1], [0], [0], [1], [0, 0, 1, 1], [], []>} : vector<16x128xbf16>, vector<128x128xbf16>, vector<16x128xf32> -> vector<16x128xf32>
    %c5_40 = arith.constant 5 : index
    %c0_41 = arith.constant 0 : index
    %c0_42 = arith.constant 0 : index
    %62 = vector.load %arg4[%c5_40, %c0_41, %c0_42] : memref<9x1x128xf32, #tpu.memory_space<vmem>>, vector<1x1x128xf32>
    %63 = vector.shape_cast %62 : vector<1x1x128xf32> to vector<1x128xf32>
    %64 = vector.broadcast %63 : vector<1x128xf32> to vector<16x128xf32>
    %65 = arith.addf %61, %64 : vector<16x128xf32>
    %cst_43 = arith.constant 0.000000e+00 : f32
    %66 = vector.broadcast %cst_43 : f32 to vector<16x128xf32>
    %67 = arith.maximumf %65, %66 : vector<16x128xf32>
    %68 = arith.truncf %67 : vector<16x128xf32> to vector<16x128xbf16>
    %c6 = arith.constant 6 : index
    %c0_44 = arith.constant 0 : index
    %c0_45 = arith.constant 0 : index
    %69 = vector.load %arg3[%c6, %c0_44, %c0_45] : memref<9x128x128xbf16, #tpu.memory_space<vmem>>, vector<1x128x128xbf16>
    %70 = vector.shape_cast %69 : vector<1x128x128xbf16> to vector<128x128xbf16>
    %cst_46 = arith.constant dense<0.000000e+00> : vector<16x128xf32>
    %71 = tpu.matmul %68, %70, %cst_46 {dimension_numbers = #tpu.dot_dimension_numbers<[1], [0], [0], [1], [0, 0, 1, 1], [], []>} : vector<16x128xbf16>, vector<128x128xbf16>, vector<16x128xf32> -> vector<16x128xf32>
    %c6_47 = arith.constant 6 : index
    %c0_48 = arith.constant 0 : index
    %c0_49 = arith.constant 0 : index
    %72 = vector.load %arg4[%c6_47, %c0_48, %c0_49] : memref<9x1x128xf32, #tpu.memory_space<vmem>>, vector<1x1x128xf32>
    %73 = vector.shape_cast %72 : vector<1x1x128xf32> to vector<1x128xf32>
    %74 = vector.broadcast %73 : vector<1x128xf32> to vector<16x128xf32>
    %75 = arith.addf %71, %74 : vector<16x128xf32>
    %76 = arith.negf %75 : vector<16x128xf32>
    %77 = math.exp %76 : vector<16x128xf32>
    %cst_50 = arith.constant 1.000000e+00 : f32
    %78 = vector.broadcast %cst_50 : f32 to vector<16x128xf32>
    %79 = arith.addf %78, %77 : vector<16x128xf32>
    %80 = arith.divf %78, %79 : vector<16x128xf32>
    %81 = arith.truncf %80 : vector<16x128xf32> to vector<16x128xbf16>
    %c7 = arith.constant 7 : index
    %c0_51 = arith.constant 0 : index
    %c0_52 = arith.constant 0 : index
    %82 = vector.load %arg3[%c7, %c0_51, %c0_52] : memref<9x128x128xbf16, #tpu.memory_space<vmem>>, vector<1x128x128xbf16>
    %83 = vector.shape_cast %82 : vector<1x128x128xbf16> to vector<128x128xbf16>
    %cst_53 = arith.constant dense<0.000000e+00> : vector<16x128xf32>
    %84 = tpu.matmul %81, %83, %cst_53 {dimension_numbers = #tpu.dot_dimension_numbers<[1], [0], [0], [1], [0, 0, 1, 1], [], []>} : vector<16x128xbf16>, vector<128x128xbf16>, vector<16x128xf32> -> vector<16x128xf32>
    %c7_54 = arith.constant 7 : index
    %c0_55 = arith.constant 0 : index
    %c0_56 = arith.constant 0 : index
    %85 = vector.load %arg4[%c7_54, %c0_55, %c0_56] : memref<9x1x128xf32, #tpu.memory_space<vmem>>, vector<1x1x128xf32>
    %86 = vector.shape_cast %85 : vector<1x1x128xf32> to vector<1x128xf32>
    %87 = vector.broadcast %86 : vector<1x128xf32> to vector<16x128xf32>
    %88 = arith.addf %84, %87 : vector<16x128xf32>
    %89 = arith.negf %88 : vector<16x128xf32>
    %90 = math.exp %89 : vector<16x128xf32>
    %cst_57 = arith.constant 1.000000e+00 : f32
    %91 = vector.broadcast %cst_57 : f32 to vector<16x128xf32>
    %92 = arith.addf %91, %90 : vector<16x128xf32>
    %93 = arith.divf %91, %92 : vector<16x128xf32>
    %94 = arith.mulf %88, %93 : vector<16x128xf32>
    %95 = arith.truncf %94 : vector<16x128xf32> to vector<16x128xbf16>
    %c8 = arith.constant 8 : index
    %c0_58 = arith.constant 0 : index
    %c0_59 = arith.constant 0 : index
    %96 = vector.load %arg3[%c8, %c0_58, %c0_59] : memref<9x128x128xbf16, #tpu.memory_space<vmem>>, vector<1x128x128xbf16>
    %97 = vector.shape_cast %96 : vector<1x128x128xbf16> to vector<128x128xbf16>
    %cst_60 = arith.constant dense<0.000000e+00> : vector<16x128xf32>
    %98 = tpu.matmul %95, %97, %cst_60 {dimension_numbers = #tpu.dot_dimension_numbers<[1], [0], [0], [1], [0, 0, 1, 1], [], []>} : vector<16x128xbf16>, vector<128x128xbf16>, vector<16x128xf32> -> vector<16x128xf32>
    %c8_61 = arith.constant 8 : index
    %c0_62 = arith.constant 0 : index
    %c0_63 = arith.constant 0 : index
    %99 = vector.load %arg4[%c8_61, %c0_62, %c0_63] : memref<9x1x128xf32, #tpu.memory_space<vmem>>, vector<1x1x128xf32>
    %100 = vector.shape_cast %99 : vector<1x1x128xf32> to vector<1x128xf32>
    %101 = vector.broadcast %100 : vector<1x128xf32> to vector<16x128xf32>
    %102 = arith.addf %98, %101 : vector<16x128xf32>
    %103 = arith.negf %102 : vector<16x128xf32>
    %104 = math.exp %103 : vector<16x128xf32>
    %cst_64 = arith.constant 1.000000e+00 : f32
    %105 = vector.broadcast %cst_64 : f32 to vector<16x128xf32>
    %106 = arith.addf %105, %104 : vector<16x128xf32>
    %107 = arith.divf %105, %106 : vector<16x128xf32>
    %c0_65 = arith.constant 0 : index
    %c0_66 = arith.constant 0 : index
    %108 = vector.load %arg5[%c0_65, %c0_66] : memref<16x128xf32, #tpu.memory_space<vmem>>, vector<16x128xf32>
    tpu.vector_store %arg5[%c0_65, %c0_66], %107 {strides = array<i32>} : memref<16x128xf32, #tpu.memory_space<vmem>>, vector<16x128xf32>,
    %c0_67 = arith.constant 0 : index
    %c0_68 = arith.constant 0 : index
    %109 = vector.load %arg6[%c0_67, %c0_68] : memref<16x128xf32, #tpu.memory_space<vmem>>, vector<16x128xf32>
    tpu.vector_store %arg6[%c0_67, %c0_68], %57 {strides = array<i32>} : memref<16x128xf32, #tpu.memory_space<vmem>>, vector<16x128xf32>,
    %c0_69 = arith.constant 0 : index
    %c0_70 = arith.constant 0 : index
    %110 = vector.load %arg7[%c0_69, %c0_70] : memref<16x128xf32, #tpu.memory_space<vmem>>, vector<16x128xf32>
    tpu.vector_store %arg7[%c0_69, %c0_70], %44 {strides = array<i32>} : memref<16x128xf32, #tpu.memory_space<vmem>>, vector<16x128xf32>,
    %c0_71 = arith.constant 0 : index
    %c0_72 = arith.constant 0 : index
    %111 = vector.load %arg8[%c0_71, %c0_72] : memref<16x128xf32, #tpu.memory_space<vmem>>, vector<16x128xf32>
    tpu.vector_store %arg8[%c0_71, %c0_72], %51 {strides = array<i32>} : memref<16x128xf32, #tpu.memory_space<vmem>>, vector<16x128xf32>,
    return
  }
  func.func @transform_0(%arg0: i32) -> (i32, i32) {
    %c0_i32 = arith.constant 0 : i32
    %c0_i32_0 = arith.constant 0 : i32
    return %arg0, %c0_i32 : i32, i32
  }
  func.func @transform_1(%arg0: i32) -> (i32, i32) {
    %c0_i32 = arith.constant 0 : i32
    %c0_i32_0 = arith.constant 0 : i32
    return %arg0, %c0_i32 : i32, i32
  }
  func.func @transform_2(%arg0: i32) -> (i32, i32, i32) {
    %c0_i32 = arith.constant 0 : i32
    %c0_i32_0 = arith.constant 0 : i32
    %c0_i32_1 = arith.constant 0 : i32
    %c0_i32_2 = arith.constant 0 : i32
    return %c0_i32, %c0_i32_0, %c0_i32_1 : i32, i32, i32
  }
  func.func @transform_3(%arg0: i32) -> (i32, i32, i32) {
    %c0_i32 = arith.constant 0 : i32
    %c0_i32_0 = arith.constant 0 : i32
    %c0_i32_1 = arith.constant 0 : i32
    %c0_i32_2 = arith.constant 0 : i32
    return %c0_i32, %c0_i32_0, %c0_i32_1 : i32, i32, i32
  }
  func.func @transform_4(%arg0: i32) -> (i32, i32) {
    %c0_i32 = arith.constant 0 : i32
    %c0_i32_0 = arith.constant 0 : i32
    return %arg0, %c0_i32 : i32, i32
  }
  func.func @transform_5(%arg0: i32) -> (i32, i32) {
    %c0_i32 = arith.constant 0 : i32
    %c0_i32_0 = arith.constant 0 : i32
    return %arg0, %c0_i32 : i32, i32
  }
  func.func @transform_6(%arg0: i32) -> (i32, i32) {
    %c0_i32 = arith.constant 0 : i32
    %c0_i32_0 = arith.constant 0 : i32
    return %arg0, %c0_i32 : i32, i32
  }
  func.func @transform_7(%arg0: i32) -> (i32, i32) {
    %c0_i32 = arith.constant 0 : i32
    %c0_i32_0 = arith.constant 0 : i32
    return %arg0, %c0_i32 : i32, i32
  }
}

</mosaic_0001>

<bundles_post_ra>
// kernel: tpu_custom_call.1
= control target key start
LH: loop header
LB: loop body
LE: loop exit
PB: predicated region body
PF: predicated region fallthrough
CT: control target
= control target key end

     0   :  { %13 = vsyncpa [#allocation3], 0  ;;  %s2212_s0 = inlined_call_operand.hbm [shape: bf16[16,128], index: 0, kind: input, shape index: {}]   ;;  %s2213_s1 = inlined_call_operand.hbm [shape: f32[16,128], index: 1, kind: input, shape index: {}]   ;;  %s2214_s2 = inlined_call_operand.hbm [shape: bf16[9,128,128], index: 2, kind: input, shape index: {}]   ;;  %s2215_s3 = inlined_call_operand.hbm [shape: f32[9,1,128], index: 3, kind: input, shape index: {}]   ;;  %s2216_s4 = inlined_call_operand.hbm [shape: f32[16,128], index: 4, kind: output, shape index: {0}]   ;;  %s2217_s5 = inlined_call_operand.hbm [shape: f32[16,128], index: 5, kind: output, shape index: {1}]   ;;  %s2218_s6 = inlined_call_operand.hbm [shape: f32[16,128], index: 6, kind: output, shape index: {2}]   ;;  %s2219_s7 = inlined_call_operand.hbm [shape: f32[16,128], index: 7, kind: output, shape index: {3}]  }
   0x1   :  { %14 = vsyncpa [#allocation6], 0 }
   0x2   :  { %15 = vsyncpa [#allocation9], 0 }
   0x3   :  { %16 = vsyncpa [#allocation4], 0 }
   0x4   :  { %17 = vsyncpa [#allocation12], 0 }
   0x5   :  { %18 = vsyncpa [#allocation15], 0  ;;  %s1947_s24 = smov [#allocation5]   ;;  %s1759_s28 = scalar_lea.hbm %s2213_s1, 256 }
   0x6   :  { %s36_s25 = sshll.u32 %s1947_s24, 4  ;;  %p1760_p0 = scmp.ne.s32.totalorder %s2213_s1, %s1759_s28  ;;  %s37_s25 = int_to_ptr.vmem [resolvable:$true] %s36_s25 }
   0x7   :  { %p1763_p1 = scmp.lt.u32.totalorder %s1759_s28, %s2213_s1 }
   0x9   :  { %p1765_p2 = pnand %p1763_p1, %p1760_p0 }
   0xb   :  { %1768 = shalt.err (!%p1765_p2)
}
   0xc   :  { %s1769_s10 = scalar_lea.vmem %s37_s25, 256  ;;  %p1774_p4 = scmp.lt.s32.totalorder %s37_s25, %s37_s25 }
   0xd   :  { %p1770_p3 = scmp.ne.s32.totalorder %s37_s25, %s1769_s10  ;;  %p1775_p5 = scmp.lt.s32.totalorder %s1769_s10, %s1769_s10 }
   0xf   :  { %p1776_p6 = por %p1775_p5, %p1774_p4 }
  0x11   :  { %p1777_p7 = pnand %p1776_p6, %p1770_p3 }
  0x13   :  { %1780 = shalt.err (!%p1777_p7)
}
  0x14   :  { %s1948_s11 = smov 128   ;;  %s1949_s12 = smov 8  }
  0x15   :  { %42 = dma.hbm_to_vmem [thread:$0]  %s2213_s1, 256, %s37_s25, [#allocation6], %s1948_s11, %s1948_s11, %s1949_s12  }
  0x16   :  { %s1950_s15 = smov [#allocation2]   ;;  %s1781_s19 = scalar_lea.hbm %s2212_s0, 128 }
  0x17   :  { %s24_s16 = sshll.u32 %s1950_s15, 4  ;;  %p1782_p8 = scmp.ne.s32.totalorder %s2212_s0, %s1781_s19  ;;  %s25_s16 = int_to_ptr.vmem [resolvable:$true] %s24_s16 }
  0x18   :  { %p1785_p9 = scmp.lt.u32.totalorder %s1781_s19, %s2212_s0 }
  0x1a   :  { %p1787_p10 = pnand %p1785_p9, %p1782_p8 }
  0x1c   :  { %1790 = shalt.err (!%p1787_p10)
}
  0x1d   :  { %s1791_s24 = scalar_lea.vmem %s25_s16, 128  ;;  %p1796_p12 = scmp.lt.s32.totalorder %s25_s16, %s25_s16 }
  0x1e   :  { %p1792_p11 = scmp.ne.s32.totalorder %s25_s16, %s1791_s24  ;;  %p1797_p13 = scmp.lt.s32.totalorder %s1791_s24, %s1791_s24 }
  0x20   :  { %p1798_p0 = por %p1797_p13, %p1796_p12 }
  0x22   :  { %p1799_p1 = pnand %p1798_p0, %p1792_p11 }
  0x24   :  { %1802 = shalt.err (!%p1799_p1)
}
  0x25   :  { %s1951_s1 = smov 64   ;;  %s1952_s25 = smov 4  }
  0x26   :  { %30 = dma.hbm_to_vmem [thread:$0]  %s2212_s0, 128, %s25_s16, [#allocation3], %s1951_s1, %s1951_s1, %s1952_s25  }
  0x27   :  { %s1953_s28 = smov [#allocation7]   ;;  %s1954_s30 = smov [#allocation8]  }
  0x28   :  { %s48_s29 = sshll.u32 %s1953_s28, 4  ;;  %s60_s8 = sshll.u32 %s1954_s30, 4  ;;  %s49_s29 = int_to_ptr.vmem [resolvable:$true] %s48_s29  ;;  %s2030_s8 = int_to_ptr.vmem [resolvable:$true] %s60_s8 }
  0x29   :  { %s1803_s13 = scalar_lea.hbm %s2214_s2, 9216 }
  0x2a   :  { %p1804_p2 = scmp.ne.s32.totalorder %s2214_s2, %s1803_s13  ;;  %p1807_p3 = scmp.lt.u32.totalorder %s1803_s13, %s2214_s2 }
  0x2c   :  { %p1809_p4 = pnand %p1807_p3, %p1804_p2 }
  0x2e   :  { %1812 = shalt.err (!%p1809_p4)
}
  0x2f   :  { %s1813_s0 = scalar_lea.vmem %s49_s29, 9216  ;;  %p1818_p6 = scmp.lt.s32.totalorder %s49_s29, %s49_s29 }
  0x30   :  { %p1814_p5 = scmp.ne.s32.totalorder %s49_s29, %s1813_s0  ;;  %p1819_p7 = scmp.lt.s32.totalorder %s1813_s0, %s1813_s0 }
  0x32   :  { %p1820_p8 = por %p1819_p7, %p1818_p6 }
  0x34   :  { %p1821_p9 = pnand %p1820_p8, %p1814_p5 }
  0x36   :  { %1824 = shalt.err (!%p1821_p9)
}
  0x37   :  { %54 = dma.hbm_to_vmem [thread:$0]  %s2214_s2, 9216, %s49_s29, [#allocation6], %s1951_s1, %s1951_s1, %s1952_s25  }
  0x38   :  { %s1825_s22 = scalar_lea.hbm %s2215_s3, 144 }
  0x39   :  { %p1826_p10 = scmp.ne.s32.totalorder %s2215_s3, %s1825_s22  ;;  %p1829_p11 = scmp.lt.u32.totalorder %s1825_s22, %s2215_s3 }
  0x3b   :  { %p1831_p12 = pnand %p1829_p11, %p1826_p10 }
  0x3d   :  { %1834 = shalt.err (!%p1831_p12)
}
  0x3e   :  { %s1835_s28 = scalar_lea.vmem %s2030_s8, 144  ;;  %s1839_s2 = scalar_lea.vmem %s2030_s8, 160 }
  0x3f   :  { %p1836_p13 = scmp.ne.s32.totalorder %s2030_s8, %s1835_s28  ;;  %p1840_p0 = scmp.lt.s32.totalorder %s2030_s8, %s2030_s8 }
  0x40   :  { %p1841_p1 = scmp.lt.s32.totalorder %s1839_s2, %s1835_s28 }
  0x42   :  { %p1842_p2 = por %p1841_p1, %p1840_p0 }
  0x44   :  { %p1843_p3 = pnand %p1842_p2, %p1836_p13 }
  0x46   :  { %1846 = shalt.err (!%p1843_p3)
}
  0x47   :  { %s1955_s1 = smov 16   ;;  %s1956_s25 = smov 1  }
  0x48   :  { %66 = dma.hbm_to_vmem [thread:$0]  %s2215_s3, 144, %s2030_s8, [#allocation9], %s1955_s1, %s1955_s1, %s1956_s25  }
  0x49   :  { %1935 = dma.done.wait [#allocation3], 128  }
  0x4a   :  { %1936 = vsyncadd [#allocation3], 4294967168 }
  0x4b   :  { %1937 = dma.done.wait [#allocation6], 9472  }
  0x4c   :  { %1938 = vsyncadd [#allocation6], 4294957824 }
  0x4d   :  { %1939 = dma.done.wait [#allocation9], 144  }
  0x4e   :  { %1940 = vsyncadd [#allocation9], 4294967152  ;;  %v1957_v0 = vmov 0.0   ;;  %vm1958_vm0 = vmmov 0   ;;  %v1642_v1 = vld [vmem:[#allocation7] sm:$0xff]   ;;  %v1643_v2 = vld [vmem:[#allocation7 + $0x8] sm:$0xff]  }
  0x4f   :  { %1446 = vmatprep.subr.bf16.mxu0 %v1957_v0  ;;  %1462 = vmatprep.mubr.msk.bf16.mxu0 %vm1958_vm0, %v1957_v0  ;;  %v1644_v3 = vld [vmem:[#allocation7 + $0x10] sm:$0xff]   ;;  %v1651_v4 = vld [vmem:[#allocation7 + $0x40] sm:$0xff]   ;;  %v1645_v5 = vld [vmem:[#allocation7 + $0x18] sm:$0xff]   ;;  %s1959_s3 = smov [#allocation11]  }
  0x50   :  { %1466 = vmatprep.subr.bf16.mxu1 %v1957_v0  ;;  %1482 = vmatprep.mubr.msk.bf16.mxu1 %vm1958_vm0, %v1957_v0  ;;  %v1652_v6 = vld [vmem:[#allocation7 + $0x48] sm:$0xff]   ;;  %v1646_v7 = vld [vmem:[#allocation7 + $0x20] sm:$0xff]   ;;  %v1653_v8 = vld [vmem:[#allocation7 + $0x50] sm:$0xff]   ;;  %s1224_s8 = sshll.u32 %s1959_s3, 4  ;;  %s1225_s8 = int_to_ptr.vmem [resolvable:$true] %s1224_s8 }
  0x51   :  { %1447 = vmatpush3.bf16.msra.mxu0 %v1642_v1  ;;  %1467 = vmatpush3.bf16.msra.mxu1 %v1651_v4  ;;  %v1647_v9 = vld [vmem:[#allocation7 + $0x28] sm:$0xff]   ;;  %v1654_v10 = vld [vmem:[#allocation7 + $0x58] sm:$0xff]   ;;  %v1648_v11 = vld [vmem:[#allocation7 + $0x30] sm:$0xff]   ;;  %s1847_s9 = scalar_lea.vmem %s1225_s8, 256  ;;  %p1852_p5 = scmp.lt.s32.totalorder %s1225_s8, %s1225_s8 }
  0x52   :  { %1448 = vmatprep.subr.bf16.mxu0 %v1957_v0  ;;  %1468 = vmatprep.subr.bf16.mxu1 %v1957_v0  ;;  %v1655_v12 = vld [vmem:[#allocation7 + $0x60] sm:$0xff]   ;;  %v1649_v13 = vld [vmem:[#allocation7 + $0x38] sm:$0xff]   ;;  %v1656_v14 = vld [vmem:[#allocation7 + $0x68] sm:$0xff]   ;;  %p1848_p4 = scmp.ne.s32.totalorder %s1225_s8, %s1847_s9  ;;  %p1853_p6 = scmp.lt.s32.totalorder %s1847_s9, %s1847_s9 }
  0x53   :  { %v1650_v15 = vld [vmem:[#allocation2] sm:$0xff]   ;;  %v1657_v16 = vld [vmem:[#allocation7 + $0x70] sm:$0xff]   ;;  %v1658_v17 = vld [vmem:[#allocation7 + $0x78] sm:$0xff]  }
  0x54   :  { %v1273_v18 = vld [vmem:[#allocation8] ss:$0 sm:$0xff]  ;;  %v1660_v29 = vld [vmem:[#allocation7 + $0x88] sm:$0xff]   ;;  %v1661_v30 = vld [vmem:[#allocation7 + $0x90] sm:$0xff]   ;;  %p1854_p7 = por %p1853_p6, %p1852_p5 }
  0x55   :  { %1449 = vmatpush3.bf16.msra.mxu0 %v1643_v2  ;;  %1469 = vmatpush3.bf16.msra.mxu1 %v1652_v6  ;;  %v1659_v28 = vld [vmem:[#allocation7 + $0x80] sm:$0xff]   ;;  %v1662_v31 = vld [vmem:[#allocation7 + $0x98] sm:$0xff]   ;;  %v1664_v33 = vld [vmem:[#allocation7 + $0xa8] sm:$0xff]  }
  0x56   :  { %1450 = vmatprep.subr.bf16.mxu0 %v1957_v0  ;;  %1470 = vmatprep.subr.bf16.mxu1 %v1957_v0  ;;  %v1663_v32 = vld [vmem:[#allocation7 + $0xa0] sm:$0xff]   ;;  %v1665_v34 = vld [vmem:[#allocation7 + $0xb0] sm:$0xff]   ;;  %v1666_v35 = vld [vmem:[#allocation7 + $0xb8] sm:$0xff]   ;;  %p1855_p8 = pnand %p1854_p7, %p1848_p4 }
  0x57   :  { %v1283_v36 = vld [vmem:[#allocation8 + $0x1] ss:$0 sm:$0xff]  ;;  %v1669_v54 = vld [vmem:[#allocation7 + $0xc8] sm:$0xff]   ;;  %v1671_v56 = vld [vmem:[#allocation7 + $0xd0] sm:$0xff]  }
  0x58   :  { %v1667_v52 = vld [vmem:[#allocation7 + $0xc0] sm:$0xff]   ;;  %v1670_v55 = vld [vmem:[#allocation7 + $0x108] sm:$0xff]   ;;  %v1672_v57 = vld [vmem:[#allocation7 + $0x110] sm:$0xff]  }
  0x59   :  { %1451 = vmatpush3.bf16.msra.mxu0 %v1644_v3  ;;  %1471 = vmatpush3.bf16.msra.mxu1 %v1653_v8  ;;  %v1668_v53 = vld [vmem:[#allocation7 + $0x100] sm:$0xff]   ;;  %v1673_v58 = vld [vmem:[#allocation7 + $0xd8] sm:$0xff]   ;;  %v1677_v62 = vld [vmem:[#allocation7 + $0xe8] sm:$0xff]  }
  0x5a   :  { %1452 = vmatprep.subr.bf16.mxu0 %v1957_v0  ;;  %1472 = vmatprep.subr.bf16.mxu1 %v1957_v0  ;;  %v1674_v59 = vld [vmem:[#allocation7 + $0x118] sm:$0xff]   ;;  %v1675_v60 = vld [vmem:[#allocation7 + $0xe0] sm:$0xff]   ;;  %v1678_v63 = vld [vmem:[#allocation7 + $0x128] sm:$0xff]  }
  0x5b   :  { %v1676_v61 = vld [vmem:[#allocation7 + $0x120] sm:$0xff]   ;;  %v1679_v1 = vld [vmem:[#allocation7 + $0xf0] sm:$0xff]   ;;  %v1681_v3 = vld [vmem:[#allocation7 + $0xf8] sm:$0xff]  }
  0x5c   :  { %v1680_v2 = vld [vmem:[#allocation7 + $0x130] sm:$0xff]   ;;  %v1682_v4 = vld [vmem:[#allocation7 + $0x138] sm:$0xff]  }
  0x5d   :  { %1453 = vmatpush3.bf16.msra.mxu0 %v1645_v5  ;;  %1473 = vmatpush3.bf16.msra.mxu1 %v1654_v10  ;;  %v1294_v5 = vld [vmem:[#allocation8 + $0x2] ss:$0 sm:$0xff] }
  0x5e   :  { %1454 = vmatprep.subr.bf16.mxu0 %v1957_v0  ;;  %1474 = vmatprep.subr.bf16.mxu1 %v1957_v0 }
  0x61   :  { %1455 = vmatpush3.bf16.msra.mxu0 %v1646_v7  ;;  %1475 = vmatpush3.bf16.msra.mxu1 %v1655_v12 }
  0x62   :  { %1456 = vmatprep.subr.bf16.mxu0 %v1957_v0  ;;  %1476 = vmatprep.subr.bf16.mxu1 %v1957_v0 }
  0x65   :  { %1457 = vmatpush3.bf16.msra.mxu0 %v1647_v9  ;;  %1477 = vmatpush3.bf16.msra.mxu1 %v1656_v14 }
  0x66   :  { %1458 = vmatprep.subr.bf16.mxu0 %v1957_v0  ;;  %1478 = vmatprep.subr.bf16.mxu1 %v1957_v0 }
  0x69   :  { %1459 = vmatpush3.bf16.msra.mxu0 %v1648_v11  ;;  %1479 = vmatpush3.bf16.msra.mxu1 %v1657_v16 }
  0x6a   :  { %1460 = vmatprep.subr.bf16.mxu0 %v1957_v0  ;;  %1480 = vmatprep.subr.bf16.mxu1 %v1957_v0 }
  0x6d   :  { %1461 = vmatpush3.bf16.msra.mxu0 %v1649_v13  ;;  %1481 = vmatpush3.bf16.msra.mxu1 %v1658_v17 }
  0x6e   :  { %1486 = vmatprep.subr.bf16.mxu0 %v1957_v0  ;;  %1506 = vmatprep.subr.bf16.mxu1 %v1957_v0 }
  0x70   :  { %1463 = vmatmul.mubr.bf16.vlgmr.msra.gmra.mrb[0].mxu0 %v1650_v15 }
  0x71   :  { %1502 = vmatprep.mubr.msk.bf16.mxu0 %vm1958_vm0, %v1957_v0  ;;  %1487 = vmatpush3.bf16.msra.mxu0 %v1659_v28  ;;  %v1688_v28 = vld [vmem:[#allocation7 + $0x168] sm:$0xff]  }
  0x72   :  { %1488 = vmatprep.subr.bf16.mxu0 %v1957_v0 }
  0x75   :  { %1489 = vmatpush3.bf16.msra.mxu0 %v1660_v29  ;;  %v1689_v29 = vld [vmem:[#allocation7 + $0x170] sm:$0xff]  }
  0x76   :  { %1490 = vmatprep.subr.bf16.mxu0 %v1957_v0 }
  0x79   :  { %1491 = vmatpush3.bf16.msra.mxu0 %v1661_v30  ;;  %v1690_v30 = vld [vmem:[#allocation7 + $0x178] sm:$0xff]  }
  0x7a   :  { %1492 = vmatprep.subr.bf16.mxu0 %v1957_v0 }
  0x7d   :  { %1493 = vmatpush3.bf16.msra.mxu0 %v1662_v31  ;;  %v1691_v31 = vld [vmem:[#allocation7 + $0x180] sm:$0xff]  }
  0x7e   :  { %1494 = vmatprep.subr.bf16.mxu0 %v1957_v0 }
  0x81   :  { %1495 = vmatpush3.bf16.msra.mxu0 %v1663_v32  ;;  %v1692_v32 = vld [vmem:[#allocation7 + $0x188] sm:$0xff]  }
  0x82   :  { %1496 = vmatprep.subr.bf16.mxu0 %v1957_v0 }
  0x85   :  { %1497 = vmatpush3.bf16.msra.mxu0 %v1664_v33  ;;  %v1693_v33 = vld [vmem:[#allocation7 + $0x190] sm:$0xff]  }
  0x86   :  { %1498 = vmatprep.subr.bf16.mxu0 %v1957_v0 }
  0x89   :  { %1499 = vmatpush3.bf16.msra.mxu0 %v1665_v34  ;;  %v1694_v34 = vld [vmem:[#allocation7 + $0x198] sm:$0xff]  }
  0x8a   :  { %1500 = vmatprep.subr.bf16.mxu0 %v1957_v0 }
  0x8d   :  { %1501 = vmatpush3.bf16.msra.mxu0 %v1666_v35  ;;  %v1695_v35 = vld [vmem:[#allocation7 + $0x1a0] sm:$0xff]  }
  0x8e   :  { %1526 = vmatprep.subr.bf16.mxu0 %v1957_v0 }
 0x143   :  { %v193_v19 = vpop.f32.mrb[0].mxu0 }
 0x144   :  { %v194_v20 = vadd.f32 %v1273_v18, %v193_v19  ;;  %v1464_v21 = vpop.f32.mrb[1].mxu0 }
 0x145   :  { %v196_v22 = vpop.f32.mrb[2].mxu0 }
 0x146   :  { %v197_v23 = vadd.f32 %v1273_v18, %v196_v22  ;;  %v1465_v24 = vpop.f32.mrb[3].mxu0  ;;  %v200_v25 = vmax.f32 %v194_v20, 0.0  ;;  %v1683_v22 = vld [vmem:[#allocation7 + $0x140] sm:$0xff]  }
 0x147   :  { %v1684_v24 = vld [vmem:[#allocation7 + $0x148] sm:$0xff]  }
 0x148   :  { %v201_v26 = vmax.f32 %v197_v23, 0.0 }
 0x14a   :  { %v202_v27 = vpack.c.bf16 %v201_v26, %v200_v25  ;;  %v1685_v25 = vld [vmem:[#allocation7 + $0x150] sm:$0xff]   ;;  %v1686_v26 = vld [vmem:[#allocation7 + $0x158] sm:$0xff]  }
 0x14c   :  { %1483 = vmatmul.mubr.bf16.vlgmr.msra.gmra.mrb[0].mxu1 %v202_v27  ;;  %v1687_v27 = vld [vmem:[#allocation7 + $0x160] sm:$0xff]  }
 0x14d   :  { %1522 = vmatprep.mubr.msk.bf16.mxu1 %vm1958_vm0, %v1957_v0  ;;  %1507 = vmatpush3.bf16.msra.mxu1 %v1667_v52 }
 0x14e   :  { %1508 = vmatprep.subr.bf16.mxu1 %v1957_v0 }
 0x151   :  { %1509 = vmatpush3.bf16.msra.mxu1 %v1669_v54 }
 0x152   :  { %1510 = vmatprep.subr.bf16.mxu1 %v1957_v0 }
 0x155   :  { %1511 = vmatpush3.bf16.msra.mxu1 %v1671_v56 }
 0x156   :  { %1512 = vmatprep.subr.bf16.mxu1 %v1957_v0 }
 0x159   :  { %1513 = vmatpush3.bf16.msra.mxu1 %v1673_v58 }
 0x15a   :  { %1514 = vmatprep.subr.bf16.mxu1 %v1957_v0 }
 0x15d   :  { %1515 = vmatpush3.bf16.msra.mxu1 %v1675_v60 }
 0x15e   :  { %1516 = vmatprep.subr.bf16.mxu1 %v1957_v0 }
 0x161   :  { %1517 = vmatpush3.bf16.msra.mxu1 %v1677_v62 }
 0x162   :  { %1518 = vmatprep.subr.bf16.mxu1 %v1957_v0 }
 0x165   :  { %1519 = vmatpush3.bf16.msra.mxu1 %v1679_v1  ;;  %v1697_v1 = vld [vmem:[#allocation7 + $0x1b0] sm:$0xff]  }
 0x166   :  { %1520 = vmatprep.subr.bf16.mxu1 %v1957_v0 }
 0x169   :  { %1521 = vmatpush3.bf16.msra.mxu1 %v1681_v3  ;;  %v1323_v3 = vld [vmem:[#allocation8 + $0x5] ss:$0 sm:$0xff] }
 0x16a   :  { %1546 = vmatprep.subr.bf16.mxu1 %v1957_v0 }
 0x21f   :  { %v310_v37 = vpop.f32.mrb[0].mxu1 }
 0x220   :  { %v311_v38 = vadd.f32 %v1283_v36, %v310_v37  ;;  %v1484_v39 = vpop.f32.mrb[1].mxu1  ;;  %v1305_v37 = vld [vmem:[#allocation8 + $0x3] ss:$0 sm:$0xff] }
 0x221   :  { %v313_v40 = vpop.f32.mrb[2].mxu1 }
 0x222   :  { %v1292_v41 = vmul.f32 -1.442695, %v311_v38  ;;  %v314_v42 = vadd.f32 %v1283_v36, %v313_v40  ;;  %v1485_v43 = vpop.f32.mrb[3].mxu1  ;;  %v1696_v36 = vld [vmem:[#allocation7 + $0x1a8] sm:$0xff]   ;;  %v1314_v38 = vld [vmem:[#allocation8 + $0x4] ss:$0 sm:$0xff] }
 0x224   :  { %1715 = vpow2.f32 %v1292_v41  ;;  %v1293_v44 = vmul.f32 -1.442695, %v314_v42 }
 0x226   :  { %1717 = vpow2.f32 %v1293_v44 }
 0x22e   :  { %v1716_v45 = vpop.eup %1715 }
 0x22f   :  { %v323_v46 = vadd.f32 1.0, %v1716_v45 }
 0x230   :  { %v1718_v47 = vpop.eup %1717 }
 0x231   :  { %v324_v48 = vadd.f32 1.0, %v1718_v47  ;;  %1719 = vrcp.f32 %v323_v46 }
 0x233   :  { %1721 = vrcp.f32 %v324_v48 }
 0x23b   :  { %v1720_v49 = vpop.eup %1719 }
 0x23d   :  { %v1722_v50 = vpop.eup %1721 }
 0x23e   :  { %v329_v51 = vpack.c.bf16 %v1722_v50, %v1720_v49 }
 0x240   :  { %1503 = vmatmul.mubr.bf16.vlgmr.msra.gmra.mrb[4].mxu0 %v329_v51 }
 0x241   :  { %1542 = vmatprep.mubr.msk.bf16.mxu0 %vm1958_vm0, %v1957_v0  ;;  %1527 = vmatpush3.bf16.msra.mxu0 %v1668_v53 }
 0x242   :  { %1528 = vmatprep.subr.bf16.mxu0 %v1957_v0 }
 0x245   :  { %1529 = vmatpush3.bf16.msra.mxu0 %v1670_v55  ;;  %v693_v55 = vld [vmem:[#allocation5] sm:$0xff] }
 0x246   :  { %1530 = vmatprep.subr.bf16.mxu0 %v1957_v0 }
 0x249   :  { %1531 = vmatpush3.bf16.msra.mxu0 %v1672_v57  ;;  %v694_v57 = vld [vmem:[#allocation5 + $0x8] sm:$0xff] }
 0x24a   :  { %1532 = vmatprep.subr.bf16.mxu0 %v1957_v0 }
 0x24d   :  { %1533 = vmatpush3.bf16.msra.mxu0 %v1674_v59 }
 0x24e   :  { %1534 = vmatprep.subr.bf16.mxu0 %v1957_v0 }
 0x251   :  { %1535 = vmatpush3.bf16.msra.mxu0 %v1676_v61 }
 0x252   :  { %1536 = vmatprep.subr.bf16.mxu0 %v1957_v0 }
 0x255   :  { %1537 = vmatpush3.bf16.msra.mxu0 %v1678_v63 }
 0x256   :  { %1538 = vmatprep.subr.bf16.mxu0 %v1957_v0 }
 0x259   :  { %1539 = vmatpush3.bf16.msra.mxu0 %v1680_v2  ;;  %v1698_v2 = vld [vmem:[#allocation7 + $0x1b8] sm:$0xff]  }
 0x25a   :  { %1540 = vmatprep.subr.bf16.mxu0 %v1957_v0 }
 0x25d   :  { %1541 = vmatpush3.bf16.msra.mxu0 %v1682_v4 }
 0x25e   :  { %1566 = vmatprep.subr.bf16.mxu0 %v1957_v0 }
 0x313   :  { %v437_v6 = vpop.f32.mrb[4].mxu0 }
 0x314   :  { %v438_v7 = vadd.f32 %v1294_v5, %v437_v6  ;;  %v1504_v8 = vpop.f32.mrb[5].mxu0 }
 0x315   :  { %v440_v9 = vpop.f32.mrb[6].mxu0 }
 0x316   :  { %v1303_v10 = vmul.f32 -1.442695, %v438_v7  ;;  %v441_v11 = vadd.f32 %v1294_v5, %v440_v9  ;;  %v1505_v12 = vpop.f32.mrb[7].mxu0 }
 0x318   :  { %1723 = vpow2.f32 %v1303_v10  ;;  %v1304_v13 = vmul.f32 -1.442695, %v441_v11 }
 0x31a   :  { %1725 = vpow2.f32 %v1304_v13  ;;  %v1699_v13 = vld [vmem:[#allocation7 + $0x1c0] sm:$0xff]  }
 0x322   :  { %v1724_v14 = vpop.eup %1723 }
 0x323   :  { %v450_v15 = vadd.f32 1.0, %v1724_v14  ;;  %v1700_v14 = vld [vmem:[#allocation7 + $0x1c8] sm:$0xff]  }
 0x324   :  { %v1726_v16 = vpop.eup %1725 }
 0x325   :  { %1727 = vrcp.f32 %v450_v15  ;;  %v451_v17 = vadd.f32 1.0, %v1726_v16  ;;  %v1701_v15 = vld [vmem:[#allocation7 + $0x1d0] sm:$0xff]   ;;  %v1702_v16 = vld [vmem:[#allocation7 + $0x1d8] sm:$0xff]  }
 0x327   :  { %1729 = vrcp.f32 %v451_v17  ;;  %v1703_v17 = vld [vmem:[#allocation7 + $0x1e0] sm:$0xff]  }
 0x32f   :  { %v1728_v18 = vpop.eup %1727 }
 0x330   :  { %v456_v20 = vmul.f32 %v1728_v18, %v438_v7  ;;  %v1704_v18 = vld [vmem:[#allocation7 + $0x1e8] sm:$0xff]  }
 0x331   :  { %v1730_v19 = vpop.eup %1729 }
 0x332   :  { %v457_v21 = vmul.f32 %v1730_v19, %v441_v11  ;;  %v1705_v19 = vld [vmem:[#allocation7 + $0x1f0] sm:$0xff]  }
 0x334   :  { %v458_v23 = vpack.c.bf16 %v457_v21, %v456_v20  ;;  %v1706_v20 = vld [vmem:[#allocation7 + $0x1f8] sm:$0xff]   ;;  %v1332_v21 = vld [vmem:[#allocation8 + $0x6] ss:$0 sm:$0xff] }
 0x336   :  { %1523 = vmatmul.mubr.bf16.vlgmr.msra.gmra.mrb[4].mxu1 %v458_v23  ;;  %1543 = vmatmul.mubr.bf16.vlgmr.msra.gmra.mrb[8].mxu0 %v458_v23 }
 0x337   :  { %1547 = vmatpush3.bf16.msra.mxu1 %v1683_v22  ;;  %1562 = vmatprep.mubr.msk.bf16.mxu1 %vm1958_vm0, %v1957_v0 }
 0x338   :  { %1548 = vmatprep.subr.bf16.mxu1 %v1957_v0  ;;  %1582 = vmatprep.mubr.msk.bf16.mxu0 %vm1958_vm0, %v1957_v0 }
 0x339   :  { %1567 = vmatpush3.bf16.msra.mxu0 %v1691_v31 }
 0x33a   :  { %1568 = vmatprep.subr.bf16.mxu0 %v1957_v0 }
 0x33b   :  { %1549 = vmatpush3.bf16.msra.mxu1 %v1684_v24 }
 0x33c   :  { %1550 = vmatprep.subr.bf16.mxu1 %v1957_v0 }
 0x33d   :  { %1569 = vmatpush3.bf16.msra.mxu0 %v1692_v32 }
 0x33e   :  { %1570 = vmatprep.subr.bf16.mxu0 %v1957_v0 }
 0x33f   :  { %1551 = vmatpush3.bf16.msra.mxu1 %v1685_v25 }
 0x340   :  { %1552 = vmatprep.subr.bf16.mxu1 %v1957_v0 }
 0x341   :  { %1571 = vmatpush3.bf16.msra.mxu0 %v1693_v33 }
 0x342   :  { %1572 = vmatprep.subr.bf16.mxu0 %v1957_v0 }
 0x343   :  { %1553 = vmatpush3.bf16.msra.mxu1 %v1686_v26 }
 0x344   :  { %1554 = vmatprep.subr.bf16.mxu1 %v1957_v0 }
 0x345   :  { %1573 = vmatpush3.bf16.msra.mxu0 %v1694_v34 }
 0x346   :  { %1574 = vmatprep.subr.bf16.mxu0 %v1957_v0 }
 0x347   :  { %1555 = vmatpush3.bf16.msra.mxu1 %v1687_v27 }
 0x348   :  { %1556 = vmatprep.subr.bf16.mxu1 %v1957_v0 }
 0x349   :  { %1575 = vmatpush3.bf16.msra.mxu0 %v1695_v35 }
 0x34a   :  { %1576 = vmatprep.subr.bf16.mxu0 %v1957_v0 }
 0x34b   :  { %1557 = vmatpush3.bf16.msra.mxu1 %v1688_v28 }
 0x34c   :  { %1558 = vmatprep.subr.bf16.mxu1 %v1957_v0 }
 0x34d   :  { %1577 = vmatpush3.bf16.msra.mxu0 %v1696_v36 }
 0x34e   :  { %1578 = vmatprep.subr.bf16.mxu0 %v1957_v0 }
 0x34f   :  { %1559 = vmatpush3.bf16.msra.mxu1 %v1689_v29 }
 0x350   :  { %1560 = vmatprep.subr.bf16.mxu1 %v1957_v0 }
 0x351   :  { %1579 = vmatpush3.bf16.msra.mxu0 %v1697_v1 }
 0x352   :  { %1580 = vmatprep.subr.bf16.mxu0 %v1957_v0 }
 0x353   :  { %1561 = vmatpush3.bf16.msra.mxu1 %v1690_v30 }
 0x354   :  { %1586 = vmatprep.subr.bf16.mxu1 %v1957_v0 }
 0x355   :  { %1581 = vmatpush3.bf16.msra.mxu0 %v1698_v2 }
 0x356   :  { %1606 = vmatprep.subr.bf16.mxu0 %v1957_v0 }
 0x409   :  { %v566_v39 = vpop.f32.mrb[4].mxu1  ;;  %v680_v40 = vpop.f32.mrb[8].mxu0 }
 0x40a   :  { %v567_v41 = vadd.f32 %v1305_v37, %v566_v39  ;;  %v681_v42 = vadd.f32 %v1314_v38, %v680_v40  ;;  %v1524_v43 = vpop.f32.mrb[5].mxu1  ;;  %v1544_v44 = vpop.f32.mrb[9].mxu0  ;;  %v1709_v39 = vld [vmem:[#allocation7 + $0x210] sm:$0xff]   ;;  %v1710_v40 = vld [vmem:[#allocation7 + $0x218] sm:$0xff]  }
 0x40b   :  { %v569_v45 = vpop.f32.mrb[6].mxu1  ;;  %v683_v46 = vpop.f32.mrb[10].mxu0  ;;  %v1713_v43 = vld [vmem:[#allocation7 + $0x230] sm:$0xff]   ;;  %v1714_v44 = vld [vmem:[#allocation7 + $0x238] sm:$0xff]  }
 0x40c   :  { %1203 = vst [vmem:[#allocation13] sm:$0xff] %v567_v41  ;;  %v687_v47 = vmul.f32 0.5, %v681_v42  ;;  %1205 = vst [vmem:[#allocation14] sm:$0xff] %v681_v42  ;;  %v570_v48 = vadd.f32 %v1305_v37, %v569_v45  ;;  %v684_v49 = vadd.f32 %v1314_v38, %v683_v46  ;;  %v1525_v50 = vpop.f32.mrb[7].mxu1  ;;  %v1545_v51 = vpop.f32.mrb[11].mxu0  ;;  %v1707_v37 = vld [vmem:[#allocation7 + $0x200] sm:$0xff]  }
 0x40d   :  { %v1708_v38 = vld [vmem:[#allocation7 + $0x208] sm:$0xff]   ;;  %v1343_v45 = vld [vmem:[#allocation8 + $0x7] ss:$0 sm:$0xff] }
 0x40e   :  { %v689_v52 = vmul.f32 1.442695, %v687_v47  ;;  %1204 = vst [vmem:[#allocation13 + $0x8] sm:$0xff] %v570_v48  ;;  %v688_v53 = vmul.f32 0.5, %v684_v49  ;;  %1206 = vst [vmem:[#allocation14 + $0x8] sm:$0xff] %v684_v49  ;;  %v1712_v42 = vld [vmem:[#allocation7 + $0x228] sm:$0xff]  }
 0x410   :  { %1731 = vpow2.f32 %v689_v52  ;;  %v691_v54 = vmul.f32 1.442695, %v688_v53 }
 0x412   :  { %1733 = vpow2.f32 %v691_v54 }
 0x41a   :  { %v1732_v56 = vpop.eup %1731 }
 0x41b   :  { %v695_v58 = vmul.f32 %v1732_v56, %v693_v55 }
 0x41c   :  { %v1734_v59 = vpop.eup %1733 }
 0x41d   :  { %v696_v60 = vmul.f32 %v1734_v59, %v694_v57  ;;  %v697_v61 = vadd.f32 %v695_v58, %v567_v41  ;;  %v1711_v41 = vld [vmem:[#allocation7 + $0x220] sm:$0xff]  }
 0x41f   :  { %v698_v62 = vadd.f32 %v696_v60, %v570_v48  ;;  %1201 = vst [vmem:[#allocation11] sm:$0xff] %v697_v61 }
 0x421   :  { %v699_v63 = vpack.c.bf16 %v698_v62, %v697_v61  ;;  %1202 = vst [vmem:[#allocation11 + $0x8] sm:$0xff] %v698_v62 }
 0x423   :  { %1563 = vmatmul.mubr.bf16.vlgmr.msra.gmra.mrb[8].mxu1 %v699_v63 }
 0x424   :  { %1602 = vmatprep.mubr.msk.bf16.mxu1 %vm1958_vm0, %v1957_v0  ;;  %1587 = vmatpush3.bf16.msra.mxu1 %v1699_v13 }
 0x425   :  { %1588 = vmatprep.subr.bf16.mxu1 %v1957_v0 }
 0x428   :  { %1589 = vmatpush3.bf16.msra.mxu1 %v1700_v14 }
 0x429   :  { %1590 = vmatprep.subr.bf16.mxu1 %v1957_v0 }
 0x42c   :  { %1591 = vmatpush3.bf16.msra.mxu1 %v1701_v15 }
 0x42d   :  { %1592 = vmatprep.subr.bf16.mxu1 %v1957_v0 }
 0x430   :  { %1593 = vmatpush3.bf16.msra.mxu1 %v1702_v16 }
 0x431   :  { %1594 = vmatprep.subr.bf16.mxu1 %v1957_v0 }
 0x434   :  { %1595 = vmatpush3.bf16.msra.mxu1 %v1703_v17 }
 0x435   :  { %1596 = vmatprep.subr.bf16.mxu1 %v1957_v0 }
 0x438   :  { %1597 = vmatpush3.bf16.msra.mxu1 %v1704_v18 }
 0x439   :  { %1598 = vmatprep.subr.bf16.mxu1 %v1957_v0 }
 0x43c   :  { %1599 = vmatpush3.bf16.msra.mxu1 %v1705_v19 }
 0x43d   :  { %1600 = vmatprep.subr.bf16.mxu1 %v1957_v0 }
 0x440   :  { %1601 = vmatpush3.bf16.msra.mxu1 %v1706_v20 }
 0x4f6   :  { %v807_v4 = vpop.f32.mrb[8].mxu1 }
 0x4f7   :  { %v808_v5 = vadd.f32 %v1323_v3, %v807_v4  ;;  %v1564_v6 = vpop.f32.mrb[9].mxu1 }
 0x4f8   :  { %v810_v7 = vpop.f32.mrb[10].mxu1 }
 0x4f9   :  { %v811_v8 = vadd.f32 %v1323_v3, %v810_v7  ;;  %v1565_v9 = vpop.f32.mrb[11].mxu1  ;;  %v814_v10 = vmax.f32 %v808_v5, 0.0 }
 0x4fb   :  { %v815_v11 = vmax.f32 %v811_v8, 0.0 }
 0x4fd   :  { %v816_v12 = vpack.c.bf16 %v815_v11, %v814_v10 }
 0x4ff   :  { %1583 = vmatmul.mubr.bf16.vlgmr.msra.gmra.mrb[12].mxu0 %v816_v12 }
 0x500   :  { %1622 = vmatprep.mubr.msk.bf16.mxu0 %vm1958_vm0, %v1957_v0  ;;  %1607 = vmatpush3.bf16.msra.mxu0 %v1707_v37 }
 0x501   :  { %1608 = vmatprep.subr.bf16.mxu0 %v1957_v0 }
 0x504   :  { %1609 = vmatpush3.bf16.msra.mxu0 %v1708_v38 }
 0x505   :  { %1610 = vmatprep.subr.bf16.mxu0 %v1957_v0 }
 0x508   :  { %1611 = vmatpush3.bf16.msra.mxu0 %v1709_v39 }
 0x509   :  { %1612 = vmatprep.subr.bf16.mxu0 %v1957_v0 }
 0x50c   :  { %1613 = vmatpush3.bf16.msra.mxu0 %v1710_v40 }
 0x50d   :  { %1614 = vmatprep.subr.bf16.mxu0 %v1957_v0 }
 0x510   :  { %1615 = vmatpush3.bf16.msra.mxu0 %v1711_v41 }
 0x511   :  { %1616 = vmatprep.subr.bf16.mxu0 %v1957_v0 }
 0x514   :  { %1617 = vmatpush3.bf16.msra.mxu0 %v1712_v42 }
 0x515   :  { %1618 = vmatprep.subr.bf16.mxu0 %v1957_v0 }
 0x518   :  { %1619 = vmatpush3.bf16.msra.mxu0 %v1713_v43 }
 0x519   :  { %1620 = vmatprep.subr.bf16.mxu0 %v1957_v0 }
 0x51c   :  { %1621 = vmatpush3.bf16.msra.mxu0 %v1714_v44 }
 0x5d2   :  { %v924_v22 = vpop.f32.mrb[12].mxu0 }
 0x5d3   :  { %v925_v23 = vadd.f32 %v1332_v21, %v924_v22  ;;  %v1584_v24 = vpop.f32.mrb[13].mxu0 }
 0x5d4   :  { %v927_v25 = vpop.f32.mrb[14].mxu0 }
 0x5d5   :  { %v1341_v26 = vmul.f32 -1.442695, %v925_v23  ;;  %v928_v27 = vadd.f32 %v1332_v21, %v927_v25  ;;  %v1585_v28 = vpop.f32.mrb[15].mxu0 }
 0x5d7   :  { %1735 = vpow2.f32 %v1341_v26  ;;  %v1342_v29 = vmul.f32 -1.442695, %v928_v27 }
 0x5d9   :  { %1737 = vpow2.f32 %v1342_v29 }
 0x5e1   :  { %v1736_v30 = vpop.eup %1735 }
 0x5e2   :  { %v937_v31 = vadd.f32 1.0, %v1736_v30 }
 0x5e3   :  { %v1738_v32 = vpop.eup %1737 }
 0x5e4   :  { %v938_v33 = vadd.f32 1.0, %v1738_v32  ;;  %1739 = vrcp.f32 %v937_v31 }
 0x5e6   :  { %1741 = vrcp.f32 %v938_v33 }
 0x5ee   :  { %v1740_v34 = vpop.eup %1739 }
 0x5f0   :  { %v1742_v35 = vpop.eup %1741 }
 0x5f1   :  { %v943_v36 = vpack.c.bf16 %v1742_v35, %v1740_v34 }
 0x5f3   :  { %1603 = vmatmul.mubr.bf16.vlgmr.msra.gmra.mrb[12].mxu1 %v943_v36 }
 0x6c6   :  { %v1051_v46 = vpop.f32.mrb[12].mxu1 }
 0x6c7   :  { %v1052_v47 = vadd.f32 %v1343_v45, %v1051_v46  ;;  %v1604_v48 = vpop.f32.mrb[13].mxu1 }
 0x6c8   :  { %v1054_v49 = vpop.f32.mrb[14].mxu1 }
 0x6c9   :  { %v1352_v50 = vmul.f32 -1.442695, %v1052_v47  ;;  %v1055_v51 = vadd.f32 %v1343_v45, %v1054_v49  ;;  %v1605_v52 = vpop.f32.mrb[15].mxu1 }
 0x6cb   :  { %1743 = vpow2.f32 %v1352_v50  ;;  %v1353_v53 = vmul.f32 -1.442695, %v1055_v51 }
 0x6cd   :  { %1745 = vpow2.f32 %v1353_v53 }
 0x6d5   :  { %v1744_v54 = vpop.eup %1743 }
 0x6d6   :  { %v1064_v55 = vadd.f32 1.0, %v1744_v54 }
 0x6d7   :  { %v1746_v56 = vpop.eup %1745 }
 0x6d8   :  { %1747 = vrcp.f32 %v1064_v55  ;;  %v1065_v57 = vadd.f32 1.0, %v1746_v56 }
 0x6da   :  { %1749 = vrcp.f32 %v1065_v57 }
 0x6e2   :  { %v1748_v0 = vpop.eup %1747 }
 0x6e3   :  { %v1070_v59 = vmul.f32 %v1748_v0, %v1052_v47 }
 0x6e4   :  { %v1750_v58 = vpop.eup %1749 }
 0x6e5   :  { %v1071_v60 = vmul.f32 %v1750_v58, %v1055_v51 }
 0x6e7   :  { %v1072_v61 = vpack.c.bf16 %v1071_v60, %v1070_v59 }
 0x6e9   :  { %1623 = vmatmul.mubr.bf16.vlgmr.msra.gmra.mrb[16].mxu0 %v1072_v61 }
 0x6ea   :  { %1858 = shalt.err (!%p1855_p8)
}
 0x6eb   :  { %s1859_s14 = scalar_lea.hbm %s2217_s5, 256 }
 0x6ec   :  { %p1860_p9 = scmp.ne.s32.totalorder %s2217_s5, %s1859_s14  ;;  %p1863_p10 = scmp.lt.u32.totalorder %s1859_s14, %s2217_s5 }
 0x6ee   :  { %p1865_p11 = pnand %p1863_p10, %p1860_p9 }
 0x6f0   :  { %1868 = shalt.err (!%p1865_p11)
}
 0x6f1   :  { %1230 = dma.vmem_to_hbm [thread:$0]  %s1225_s8, 256, %s2217_s5, [#allocation12], %s1948_s11, %s1948_s11, %s1949_s12  }
 0x6f2   :  { %s1960_s20 = smov [#allocation13]   ;;  %s1961_s22 = smov [#allocation14]  }
 0x6f3   :  { %s1236_s21 = sshll.u32 %s1960_s20, 4  ;;  %s1248_s23 = sshll.u32 %s1961_s22, 4  ;;  %s1237_s21 = int_to_ptr.vmem [resolvable:$true] %s1236_s21  ;;  %s1249_s23 = int_to_ptr.vmem [resolvable:$true] %s1248_s23 }
 0x6f4   :  { %s1869_s24 = scalar_lea.vmem %s1237_s21, 256  ;;  %p1874_p13 = scmp.lt.s32.totalorder %s1237_s21, %s1237_s21 }
 0x6f5   :  { %p1870_p12 = scmp.ne.s32.totalorder %s1237_s21, %s1869_s24  ;;  %p1875_p0 = scmp.lt.s32.totalorder %s1869_s24, %s1869_s24 }
 0x6f7   :  { %p1876_p1 = por %p1875_p0, %p1874_p13 }
 0x6f9   :  { %p1877_p2 = pnand %p1876_p1, %p1870_p12 }
 0x6fb   :  { %1880 = shalt.err (!%p1877_p2)
}
 0x6fc   :  { %s1881_s28 = scalar_lea.hbm %s2218_s6, 256 }
 0x6fd   :  { %p1882_p3 = scmp.ne.s32.totalorder %s2218_s6, %s1881_s28  ;;  %p1885_p4 = scmp.lt.u32.totalorder %s1881_s28, %s2218_s6 }
 0x6ff   :  { %p1887_p5 = pnand %p1885_p4, %p1882_p3 }
 0x701   :  { %1890 = shalt.err (!%p1887_p5)
}
 0x702   :  { %1242 = dma.vmem_to_hbm [thread:$0]  %s1237_s21, 256, %s2218_s6, [#allocation12], %s1948_s11, %s1948_s11, %s1949_s12  }
 0x703   :  { %s1891_s3 = scalar_lea.vmem %s1249_s23, 256  ;;  %p1896_p7 = scmp.lt.s32.totalorder %s1249_s23, %s1249_s23 }
 0x704   :  { %p1892_p6 = scmp.ne.s32.totalorder %s1249_s23, %s1891_s3  ;;  %p1897_p8 = scmp.lt.s32.totalorder %s1891_s3, %s1891_s3 }
 0x706   :  { %p1898_p9 = por %p1897_p8, %p1896_p7 }
 0x708   :  { %p1899_p10 = pnand %p1898_p9, %p1892_p6 }
 0x70a   :  { %1902 = shalt.err (!%p1899_p10)
}
 0x70b   :  { %s1903_s10 = scalar_lea.hbm %s2219_s7, 256 }
 0x70c   :  { %p1904_p11 = scmp.ne.s32.totalorder %s2219_s7, %s1903_s10  ;;  %p1907_p12 = scmp.lt.u32.totalorder %s1903_s10, %s2219_s7 }
 0x70e   :  { %p1909_p13 = pnand %p1907_p12, %p1904_p11 }
 0x710   :  { %1912 = shalt.err (!%p1909_p13)
}
 0x711   :  { %1254 = dma.vmem_to_hbm [thread:$0]  %s1249_s23, 256, %s2219_s7, [#allocation15], %s1948_s11, %s1948_s11, %s1949_s12   ;;  %v1354_v62 = vld [vmem:[#allocation8 + $0x8] ss:$0 sm:$0xff] }
 0x712   :  { %s1962_s0 = smov [#allocation10]  }
 0x713   :  { %s1212_s16 = sshll.u32 %s1962_s0, 4  ;;  %s1213_s16 = int_to_ptr.vmem [resolvable:$true] %s1212_s16 }
 0x714   :  { %s1913_s7 = scalar_lea.vmem %s1213_s16, 256  ;;  %p1918_p1 = scmp.lt.s32.totalorder %s1213_s16, %s1213_s16 }
 0x715   :  { %p1914_p0 = scmp.ne.s32.totalorder %s1213_s16, %s1913_s7  ;;  %p1919_p2 = scmp.lt.s32.totalorder %s1913_s7, %s1913_s7 }
 0x717   :  { %p1920_p3 = por %p1919_p2, %p1918_p1 }
 0x719   :  { %p1921_p4 = pnand %p1920_p3, %p1914_p0 }
 0x7bc   :  { %v1180_v63 = vpop.f32.mrb[16].mxu0 }
 0x7bd   :  { %v1181_v1 = vadd.f32 %v1354_v62, %v1180_v63  ;;  %v1624_v2 = vpop.f32.mrb[17].mxu0 }
 0x7be   :  { %v1183_v3 = vpop.f32.mrb[18].mxu0 }
 0x7bf   :  { %v1363_v4 = vmul.f32 -1.442695, %v1181_v1  ;;  %v1184_v5 = vadd.f32 %v1354_v62, %v1183_v3  ;;  %v1625_v6 = vpop.f32.mrb[19].mxu0 }
 0x7c1   :  { %1751 = vpow2.f32 %v1363_v4  ;;  %v1364_v7 = vmul.f32 -1.442695, %v1184_v5 }
 0x7c3   :  { %1753 = vpow2.f32 %v1364_v7 }
 0x7cb   :  { %v1752_v8 = vpop.eup %1751 }
 0x7cc   :  { %v1193_v9 = vadd.f32 1.0, %v1752_v8 }
 0x7cd   :  { %v1754_v10 = vpop.eup %1753 }
 0x7ce   :  { %1755 = vrcp.f32 %v1193_v9  ;;  %v1194_v11 = vadd.f32 1.0, %v1754_v10 }
 0x7d0   :  { %1757 = vrcp.f32 %v1194_v11 }
 0x7d8   :  { %v1756_v12 = vpop.eup %1755 }
 0x7d9   :  { %1199 = vst [vmem:[#allocation10] sm:$0xff] %v1756_v12 }
 0x7da   :  { %v1758_v13 = vpop.eup %1757 }
 0x7db   :  { %1200 = vst [vmem:[#allocation10 + $0x8] sm:$0xff] %v1758_v13 }
 0x7dc   :  { %1924 = shalt.err (!%p1921_p4)
}
 0x7dd   :  { %s1925_s21 = scalar_lea.hbm %s2216_s4, 256 }
 0x7de   :  { %p1926_p5 = scmp.ne.s32.totalorder %s2216_s4, %s1925_s21  ;;  %p1929_p6 = scmp.lt.u32.totalorder %s1925_s21, %s2216_s4 }
 0x7e0   :  { %p1931_p7 = pnand %p1929_p6, %p1926_p5 }
 0x7e2   :  { %1934 = shalt.err (!%p1931_p7)
}
 0x7e3   :  { %1218 = dma.vmem_to_hbm [thread:$0]  %s1213_s16, 256, %s2216_s4, [#allocation4], %s1948_s11, %s1948_s11, %s1949_s12  }
 0x7e4   :  { %1941 = dma.done.wait [#allocation4], 256  }
 0x7e5   :  { %1942 = vsyncadd [#allocation4], 4294967040 }
 0x7e6   :  { %1943 = dma.done.wait [#allocation12], 512  }
 0x7e7   :  { %1944 = vsyncadd [#allocation12], 4294966784 }
 0x7e8   :  { %1945 = dma.done.wait [#allocation15], 256  }
 0x7e9   :  { %1946 = vsyncadd [#allocation15], 4294967040 }
 0x7ea   :  { %1267 = vsyncpa [#allocation3], 1 }
 0x7eb   :  { %1268 = vsyncpa [#allocation6], 1 }
 0x7ec   :  { %1269 = vsyncpa [#allocation9], 1 }
 0x7ed   :  { %1270 = vsyncpa [#allocation4], 1 }
 0x7ee   :  { %1271 = vsyncpa [#allocation12], 1 }
 0x7ef   :  { %1272 = vsyncpa [#allocation15], 1 }

// kernel: tpu_custom_call.1
= control target key start
LH: loop header
LB: loop body
LE: loop exit
PB: predicated region body
PF: predicated region fallthrough
CT: control target
= control target key end

     0   :  { %13 = vsyncpa [#allocation3], 0  ;;  %s2212_s0 = inlined_call_operand.hbm [shape: bf16[16,128], index: 0, kind: input, shape index: {}]   ;;  %s2213_s1 = inlined_call_operand.hbm [shape: f32[16,128], index: 1, kind: input, shape index: {}]   ;;  %s2214_s2 = inlined_call_operand.hbm [shape: bf16[9,128,128], index: 2, kind: input, shape index: {}]   ;;  %s2215_s3 = inlined_call_operand.hbm [shape: f32[9,1,128], index: 3, kind: input, shape index: {}]   ;;  %s2216_s4 = inlined_call_operand.hbm [shape: f32[16,128], index: 4, kind: output, shape index: {0}]   ;;  %s2217_s5 = inlined_call_operand.hbm [shape: f32[16,128], index: 5, kind: output, shape index: {1}]   ;;  %s2218_s6 = inlined_call_operand.hbm [shape: f32[16,128], index: 6, kind: output, shape index: {2}]   ;;  %s2219_s7 = inlined_call_operand.hbm [shape: f32[16,128], index: 7, kind: output, shape index: {3}]  }
   0x1   :  { %14 = vsyncpa [#allocation6], 0 }
   0x2   :  { %15 = vsyncpa [#allocation9], 0 }
   0x3   :  { %16 = vsyncpa [#allocation4], 0 }
   0x4   :  { %17 = vsyncpa [#allocation12], 0 }
   0x5   :  { %18 = vsyncpa [#allocation15], 0  ;;  %s1947_s24 = smov [#allocation5]   ;;  %s1759_s28 = scalar_lea.hbm %s2213_s1, 256 }
   0x6   :  { %s36_s25 = sshll.u32 %s1947_s24, 4  ;;  %p1760_p0 = scmp.ne.s32.totalorder %s2213_s1, %s1759_s28  ;;  %s37_s25 = int_to_ptr.vmem [resolvable:$true] %s36_s25 }
   0x7   :  { %p1763_p1 = scmp.lt.u32.totalorder %s1759_s28, %s2213_s1 }
   0x9   :  { %p1765_p2 = pnand %p1763_p1, %p1760_p0 }
   0xb   :  { %1768 = shalt.err (!%p1765_p2)
}
   0xc   :  { %s1769_s10 = scalar_lea.vmem %s37_s25, 256  ;;  %p1774_p4 = scmp.lt.s32.totalorder %s37_s25, %s37_s25 }
   0xd   :  { %p1770_p3 = scmp.ne.s32.totalorder %s37_s25, %s1769_s10  ;;  %p1775_p5 = scmp.lt.s32.totalorder %s1769_s10, %s1769_s10 }
   0xf   :  { %p1776_p6 = por %p1775_p5, %p1774_p4 }
  0x11   :  { %p1777_p7 = pnand %p1776_p6, %p1770_p3 }
  0x13   :  { %1780 = shalt.err (!%p1777_p7)
}
  0x14   :  { %s1948_s11 = smov 128   ;;  %s1949_s12 = smov 8  }
  0x15   :  { %42 = dma.hbm_to_vmem [thread:$0]  %s2213_s1, 256, %s37_s25, [#allocation6], %s1948_s11, %s1948_s11, %s1949_s12  }
  0x16   :  { %s1950_s15 = smov [#allocation2]   ;;  %s1781_s19 = scalar_lea.hbm %s2212_s0, 128 }
  0x17   :  { %s24_s16 = sshll.u32 %s1950_s15, 4  ;;  %p1782_p8 = scmp.ne.s32.totalorder %s2212_s0, %s1781_s19  ;;  %s25_s16 = int_to_ptr.vmem [resolvable:$true] %s24_s16 }
  0x18   :  { %p1785_p9 = scmp.lt.u32.totalorder %s1781_s19, %s2212_s0 }
  0x1a   :  { %p1787_p10 = pnand %p1785_p9, %p1782_p8 }
  0x1c   :  { %1790 = shalt.err (!%p1787_p10)
}
  0x1d   :  { %s1791_s24 = scalar_lea.vmem %s25_s16, 128  ;;  %p1796_p12 = scmp.lt.s32.totalorder %s25_s16, %s25_s16 }
  0x1e   :  { %p1792_p11 = scmp.ne.s32.totalorder %s25_s16, %s1791_s24  ;;  %p1797_p13 = scmp.lt.s32.totalorder %s1791_s24, %s1791_s24 }
  0x20   :  { %p1798_p0 = por %p1797_p13, %p1796_p12 }
  0x22   :  { %p1799_p1 = pnand %p1798_p0, %p1792_p11 }
  0x24   :  { %1802 = shalt.err (!%p1799_p1)
}
  0x25   :  { %s1951_s1 = smov 64   ;;  %s1952_s25 = smov 4  }
  0x26   :  { %30 = dma.hbm_to_vmem [thread:$0]  %s2212_s0, 128, %s25_s16, [#allocation3], %s1951_s1, %s1951_s1, %s1952_s25  }
  0x27   :  { %s1953_s28 = smov [#allocation7]   ;;  %s1954_s30 = smov [#allocation8]  }
  0x28   :  { %s48_s29 = sshll.u32 %s1953_s28, 4  ;;  %s60_s8 = sshll.u32 %s1954_s30, 4  ;;  %s49_s29 = int_to_ptr.vmem [resolvable:$true] %s48_s29  ;;  %s2030_s8 = int_to_ptr.vmem [resolvable:$true] %s60_s8 }
  0x29   :  { %s1803_s13 = scalar_lea.hbm %s2214_s2, 9216 }
  0x2a   :  { %p1804_p2 = scmp.ne.s32.totalorder %s2214_s2, %s1803_s13  ;;  %p1807_p3 = scmp.lt.u32.totalorder %s1803_s13, %s2214_s2 }
  0x2c   :  { %p1809_p4 = pnand %p1807_p3, %p1804_p2 }
  0x2e   :  { %1812 = shalt.err (!%p1809_p4)
}
  0x2f   :  { %s1813_s0 = scalar_lea.vmem %s49_s29, 9216  ;;  %p1818_p6 = scmp.lt.s32.totalorder %s49_s29, %s49_s29 }
  0x30   :  { %p1814_p5 = scmp.ne.s32.totalorder %s49_s29, %s1813_s0  ;;  %p1819_p7 = scmp.lt.s32.totalorder %s1813_s0, %s1813_s0 }
  0x32   :  { %p1820_p8 = por %p1819_p7, %p1818_p6 }
  0x34   :  { %p1821_p9 = pnand %p1820_p8, %p1814_p5 }
  0x36   :  { %1824 = shalt.err (!%p1821_p9)
}
  0x37   :  { %54 = dma.hbm_to_vmem [thread:$0]  %s2214_s2, 9216, %s49_s29, [#allocation6], %s1951_s1, %s1951_s1, %s1952_s25  }
  0x38   :  { %s1825_s22 = scalar_lea.hbm %s2215_s3, 144 }
  0x39   :  { %p1826_p10 = scmp.ne.s32.totalorder %s2215_s3, %s1825_s22  ;;  %p1829_p11 = scmp.lt.u32.totalorder %s1825_s22, %s2215_s3 }
  0x3b   :  { %p1831_p12 = pnand %p1829_p11, %p1826_p10 }
  0x3d   :  { %1834 = shalt.err (!%p1831_p12)
}
  0x3e   :  { %s1835_s28 = scalar_lea.vmem %s2030_s8, 144  ;;  %s1839_s2 = scalar_lea.vmem %s2030_s8, 160 }
  0x3f   :  { %p1836_p13 = scmp.ne.s32.totalorder %s2030_s8, %s1835_s28  ;;  %p1840_p0 = scmp.lt.s32.totalorder %s2030_s8, %s2030_s8 }
  0x40   :  { %p1841_p1 = scmp.lt.s32.totalorder %s1839_s2, %s1835_s28 }
  0x42   :  { %p1842_p2 = por %p1841_p1, %p1840_p0 }
  0x44   :  { %p1843_p3 = pnand %p1842_p2, %p1836_p13 }
  0x46   :  { %1846 = shalt.err (!%p1843_p3)
}
  0x47   :  { %s1955_s1 = smov 16   ;;  %s1956_s25 = smov 1  }
  0x48   :  { %66 = dma.hbm_to_vmem [thread:$0]  %s2215_s3, 144, %s2030_s8, [#allocation9], %s1955_s1, %s1955_s1, %s1956_s25  }
  0x49   :  { %1935 = dma.done.wait [#allocation3], 128  }
  0x4a   :  { %1936 = vsyncadd [#allocation3], 4294967168 }
  0x4b   :  { %1937 = dma.done.wait [#allocation6], 9472  }
  0x4c   :  { %1938 = vsyncadd [#allocation6], 4294957824 }
  0x4d   :  { %1939 = dma.done.wait [#allocation9], 144  }
  0x4e   :  { %1940 = vsyncadd [#allocation9], 4294967152  ;;  %v1957_v0 = vmov 0.0   ;;  %vm1958_vm0 = vmmov 0   ;;  %v1642_v1 = vld [vmem:[#allocation7] sm:$0xff]   ;;  %v1643_v2 = vld [vmem:[#allocation7 + $0x8] sm:$0xff]  }
  0x4f   :  { %1446 = vmatprep.subr.bf16.mxu0 %v1957_v0  ;;  %1462 = vmatprep.mubr.msk.bf16.mxu0 %vm1958_vm0, %v1957_v0  ;;  %v1644_v3 = vld [vmem:[#allocation7 + $0x10] sm:$0xff]   ;;  %v1651_v4 = vld [vmem:[#allocation7 + $0x40] sm:$0xff]   ;;  %v1645_v5 = vld [vmem:[#allocation7 + $0x18] sm:$0xff]   ;;  %s1959_s3 = smov [#allocation11]  }
  0x50   :  { %1466 = vmatprep.subr.bf16.mxu1 %v1957_v0  ;;  %1482 = vmatprep.mubr.msk.bf16.mxu1 %vm1958_vm0, %v1957_v0  ;;  %v1652_v6 = vld [vmem:[#allocation7 + $0x48] sm:$0xff]   ;;  %v1646_v7 = vld [vmem:[#allocation7 + $0x20] sm:$0xff]   ;;  %v1653_v8 = vld [vmem:[#allocation7 + $0x50] sm:$0xff]   ;;  %s1224_s8 = sshll.u32 %s1959_s3, 4  ;;  %s1225_s8 = int_to_ptr.vmem [resolvable:$true] %s1224_s8 }
  0x51   :  { %1447 = vmatpush3.bf16.msra.mxu0 %v1642_v1  ;;  %1467 = vmatpush3.bf16.msra.mxu1 %v1651_v4  ;;  %v1647_v9 = vld [vmem:[#allocation7 + $0x28] sm:$0xff]   ;;  %v1654_v10 = vld [vmem:[#allocation7 + $0x58] sm:$0xff]   ;;  %v1648_v11 = vld [vmem:[#allocation7 + $0x30] sm:$0xff]   ;;  %s1847_s9 = scalar_lea.vmem %s1225_s8, 256  ;;  %p1852_p5 = scmp.lt.s32.totalorder %s1225_s8, %s1225_s8 }
  0x52   :  { %1448 = vmatprep.subr.bf16.mxu0 %v1957_v0  ;;  %1468 = vmatprep.subr.bf16.mxu1 %v1957_v0  ;;  %v1655_v12 = vld [vmem:[#allocation7 + $0x60] sm:$0xff]   ;;  %v1649_v13 = vld [vmem:[#allocation7 + $0x38] sm:$0xff]   ;;  %v1656_v14 = vld [vmem:[#allocation7 + $0x68] sm:$0xff]   ;;  %p1848_p4 = scmp.ne.s32.totalorder %s1225_s8, %s1847_s9  ;;  %p1853_p6 = scmp.lt.s32.totalorder %s1847_s9, %s1847_s9 }
  0x53   :  { %v1650_v15 = vld [vmem:[#allocation2] sm:$0xff]   ;;  %v1657_v16 = vld [vmem:[#allocation7 + $0x70] sm:$0xff]   ;;  %v1658_v17 = vld [vmem:[#allocation7 + $0x78] sm:$0xff]  }
  0x54   :  { %v1273_v18 = vld [vmem:[#allocation8] ss:$0 sm:$0xff]  ;;  %v1660_v29 = vld [vmem:[#allocation7 + $0x88] sm:$0xff]   ;;  %v1661_v30 = vld [vmem:[#allocation7 + $0x90] sm:$0xff]   ;;  %p1854_p7 = por %p1853_p6, %p1852_p5 }
  0x55   :  { %1449 = vmatpush3.bf16.msra.mxu0 %v1643_v2  ;;  %1469 = vmatpush3.bf16.msra.mxu1 %v1652_v6  ;;  %v1659_v28 = vld [vmem:[#allocation7 + $0x80] sm:$0xff]   ;;  %v1662_v31 = vld [vmem:[#allocation7 + $0x98] sm:$0xff]   ;;  %v1664_v33 = vld [vmem:[#allocation7 + $0xa8] sm:$0xff]  }
  0x56   :  { %1450 = vmatprep.subr.bf16.mxu0 %v1957_v0  ;;  %1470 = vmatprep.subr.bf16.mxu1 %v1957_v0  ;;  %v1663_v32 = vld [vmem:[#allocation7 + $0xa0] sm:$0xff]   ;;  %v1665_v34 = vld [vmem:[#allocation7 + $0xb0] sm:$0xff]   ;;  %v1666_v35 = vld [vmem:[#allocation7 + $0xb8] sm:$0xff]   ;;  %p1855_p8 = pnand %p1854_p7, %p1848_p4 }
  0x57   :  { %v1283_v36 = vld [vmem:[#allocation8 + $0x1] ss:$0 sm:$0xff]  ;;  %v1669_v54 = vld [vmem:[#allocation7 + $0xc8] sm:$0xff]   ;;  %v1671_v56 = vld [vmem:[#allocation7 + $0xd0] sm:$0xff]  }
  0x58   :  { %v1667_v52 = vld [vmem:[#allocation7 + $0xc0] sm:$0xff]   ;;  %v1670_v55 = vld [vmem:[#allocation7 + $0x108] sm:$0xff]   ;;  %v1672_v57 = vld [vmem:[#allocation7 + $0x110] sm:$0xff]  }
  0x59   :  { %1451 = vmatpush3.bf16.msra.mxu0 %v1644_v3  ;;  %1471 = vmatpush3.bf16.msra.mxu1 %v1653_v8  ;;  %v1668_v53 = vld [vmem:[#allocation7 + $0x100] sm:$0xff]   ;;  %v1673_v58 = vld [vmem:[#allocation7 + $0xd8] sm:$0xff]   ;;  %v1677_v62 = vld [vmem:[#allocation7 + $0xe8] sm:$0xff]  }
  0x5a   :  { %1452 = vmatprep.subr.bf16.mxu0 %v1957_v0  ;;  %1472 = vmatprep.subr.bf16.mxu1 %v1957_v0  ;;  %v1674_v59 = vld [vmem:[#allocation7 + $0x118] sm:$0xff]   ;;  %v1675_v60 = vld [vmem:[#allocation7 + $0xe0] sm:$0xff]   ;;  %v1678_v63 = vld [vmem:[#allocation7 + $0x128] sm:$0xff]  }
  0x5b   :  { %v1676_v61 = vld [vmem:[#allocation7 + $0x120] sm:$0xff]   ;;  %v1679_v1 = vld [vmem:[#allocation7 + $0xf0] sm:$0xff]   ;;  %v1681_v3 = vld [vmem:[#allocation7 + $0xf8] sm:$0xff]  }
  0x5c   :  { %v1680_v2 = vld [vmem:[#allocation7 + $0x130] sm:$0xff]   ;;  %v1682_v4 = vld [vmem:[#allocation7 + $0x138] sm:$0xff]  }
  0x5d   :  { %1453 = vmatpush3.bf16.msra.mxu0 %v1645_v5  ;;  %1473 = vmatpush3.bf16.msra.mxu1 %v1654_v10  ;;  %v1294_v5 = vld [vmem:[#allocation8 + $0x2] ss:$0 sm:$0xff] }
  0x5e   :  { %1454 = vmatprep.subr.bf16.mxu0 %v1957_v0  ;;  %1474 = vmatprep.subr.bf16.mxu1 %v1957_v0 }
  0x61   :  { %1455 = vmatpush3.bf16.msra.mxu0 %v1646_v7  ;;  %1475 = vmatpush3.bf16.msra.mxu1 %v1655_v12 }
  0x62   :  { %1456 = vmatprep.subr.bf16.mxu0 %v1957_v0  ;;  %1476 = vmatprep.subr.bf16.mxu1 %v1957_v0 }
  0x65   :  { %1457 = vmatpush3.bf16.msra.mxu0 %v1647_v9  ;;  %1477 = vmatpush3.bf16.msra.mxu1 %v1656_v14 }
  0x66   :  { %1458 = vmatprep.subr.bf16.mxu0 %v1957_v0  ;;  %1478 = vmatprep.subr.bf16.mxu1 %v1957_v0 }
  0x69   :  { %1459 = vmatpush3.bf16.msra.mxu0 %v1648_v11  ;;  %1479 = vmatpush3.bf16.msra.mxu1 %v1657_v16 }
  0x6a   :  { %1460 = vmatprep.subr.bf16.mxu0 %v1957_v0  ;;  %1480 = vmatprep.subr.bf16.mxu1 %v1957_v0 }
  0x6d   :  { %1461 = vmatpush3.bf16.msra.mxu0 %v1649_v13  ;;  %1481 = vmatpush3.bf16.msra.mxu1 %v1658_v17 }
  0x6e   :  { %1486 = vmatprep.subr.bf16.mxu0 %v1957_v0  ;;  %1506 = vmatprep.subr.bf16.mxu1 %v1957_v0 }
  0x70   :  { %1463 = vmatmul.mubr.bf16.vlgmr.msra.gmra.mrb[0].mxu0 %v1650_v15 }
  0x71   :  { %1502 = vmatprep.mubr.msk.bf16.mxu0 %vm1958_vm0, %v1957_v0  ;;  %1487 = vmatpush3.bf16.msra.mxu0 %v1659_v28  ;;  %v1688_v28 = vld [vmem:[#allocation7 + $0x168] sm:$0xff]  }
  0x72   :  { %1488 = vmatprep.subr.bf16.mxu0 %v1957_v0 }
  0x75   :  { %1489 = vmatpush3.bf16.msra.mxu0 %v1660_v29  ;;  %v1689_v29 = vld [vmem:[#allocation7 + $0x170] sm:$0xff]  }
  0x76   :  { %1490 = vmatprep.subr.bf16.mxu0 %v1957_v0 }
  0x79   :  { %1491 = vmatpush3.bf16.msra.mxu0 %v1661_v30  ;;  %v1690_v30 = vld [vmem:[#allocation7 + $0x178] sm:$0xff]  }
  0x7a   :  { %1492 = vmatprep.subr.bf16.mxu0 %v1957_v0 }
  0x7d   :  { %1493 = vmatpush3.bf16.msra.mxu0 %v1662_v31  ;;  %v1691_v31 = vld [vmem:[#allocation7 + $0x180] sm:$0xff]  }
  0x7e   :  { %1494 = vmatprep.subr.bf16.mxu0 %v1957_v0 }
  0x81   :  { %1495 = vmatpush3.bf16.msra.mxu0 %v1663_v32  ;;  %v1692_v32 = vld [vmem:[#allocation7 + $0x188] sm:$0xff]  }
  0x82   :  { %1496 = vmatprep.subr.bf16.mxu0 %v1957_v0 }
  0x85   :  { %1497 = vmatpush3.bf16.msra.mxu0 %v1664_v33  ;;  %v1693_v33 = vld [vmem:[#allocation7 + $0x190] sm:$0xff]  }
  0x86   :  { %1498 = vmatprep.subr.bf16.mxu0 %v1957_v0 }
  0x89   :  { %1499 = vmatpush3.bf16.msra.mxu0 %v1665_v34  ;;  %v1694_v34 = vld [vmem:[#allocation7 + $0x198] sm:$0xff]  }
  0x8a   :  { %1500 = vmatprep.subr.bf16.mxu0 %v1957_v0 }
  0x8d   :  { %1501 = vmatpush3.bf16.msra.mxu0 %v1666_v35  ;;  %v1695_v35 = vld [vmem:[#allocation7 + $0x1a0] sm:$0xff]  }
  0x8e   :  { %1526 = vmatprep.subr.bf16.mxu0 %v1957_v0 }
 0x143   :  { %v193_v19 = vpop.f32.mrb[0].mxu0 }
 0x144   :  { %v194_v20 = vadd.f32 %v1273_v18, %v193_v19  ;;  %v1464_v21 = vpop.f32.mrb[1].mxu0 }
 0x145   :  { %v196_v22 = vpop.f32.mrb[2].mxu0 }
 0x146   :  { %v197_v23 = vadd.f32 %v1273_v18, %v196_v22  ;;  %v1465_v24 = vpop.f32.mrb[3].mxu0  ;;  %v200_v25 = vmax.f32 %v194_v20, 0.0  ;;  %v1683_v22 = vld [vmem:[#allocation7 + $0x140] sm:$0xff]  }
 0x147   :  { %v1684_v24 = vld [vmem:[#allocation7 + $0x148] sm:$0xff]  }
 0x148   :  { %v201_v26 = vmax.f32 %v197_v23, 0.0 }
 0x14a   :  { %v202_v27 = vpack.c.bf16 %v201_v26, %v200_v25  ;;  %v1685_v25 = vld [vmem:[#allocation7 + $0x150] sm:$0xff]   ;;  %v1686_v26 = vld [vmem:[#allocation7 + $0x158] sm:$0xff]  }
 0x14c   :  { %1483 = vmatmul.mubr.bf16.vlgmr.msra.gmra.mrb[0].mxu1 %v202_v27  ;;  %v1687_v27 = vld [vmem:[#allocation7 + $0x160] sm:$0xff]  }
 0x14d   :  { %1522 = vmatprep.mubr.msk.bf16.mxu1 %vm1958_vm0, %v1957_v0  ;;  %1507 = vmatpush3.bf16.msra.mxu1 %v1667_v52 }
 0x14e   :  { %1508 = vmatprep.subr.bf16.mxu1 %v1957_v0 }
 0x151   :  { %1509 = vmatpush3.bf16.msra.mxu1 %v1669_v54 }
 0x152   :  { %1510 = vmatprep.subr.bf16.mxu1 %v1957_v0 }
 0x155   :  { %1511 = vmatpush3.bf16.msra.mxu1 %v1671_v56 }
 0x156   :  { %1512 = vmatprep.subr.bf16.mxu1 %v1957_v0 }
 0x159   :  { %1513 = vmatpush3.bf16.msra.mxu1 %v1673_v58 }
 0x15a   :  { %1514 = vmatprep.subr.bf16.mxu1 %v1957_v0 }
 0x15d   :  { %1515 = vmatpush3.bf16.msra.mxu1 %v1675_v60 }
 0x15e   :  { %1516 = vmatprep.subr.bf16.mxu1 %v1957_v0 }
 0x161   :  { %1517 = vmatpush3.bf16.msra.mxu1 %v1677_v62 }
 0x162   :  { %1518 = vmatprep.subr.bf16.mxu1 %v1957_v0 }
 0x165   :  { %1519 = vmatpush3.bf16.msra.mxu1 %v1679_v1  ;;  %v1697_v1 = vld [vmem:[#allocation7 + $0x1b0] sm:$0xff]  }
 0x166   :  { %1520 = vmatprep.subr.bf16.mxu1 %v1957_v0 }
 0x169   :  { %1521 = vmatpush3.bf16.msra.mxu1 %v1681_v3  ;;  %v1323_v3 = vld [vmem:[#allocation8 + $0x5] ss:$0 sm:$0xff] }
 0x16a   :  { %1546 = vmatprep.subr.bf16.mxu1 %v1957_v0 }
 0x21f   :  { %v310_v37 = vpop.f32.mrb[0].mxu1 }
 0x220   :  { %v311_v38 = vadd.f32 %v1283_v36, %v310_v37  ;;  %v1484_v39 = vpop.f32.mrb[1].mxu1  ;;  %v1305_v37 = vld [vmem:[#allocation8 + $0x3] ss:$0 sm:$0xff] }
 0x221   :  { %v313_v40 = vpop.f32.mrb[2].mxu1 }
 0x222   :  { %v1292_v41 = vmul.f32 -1.442695, %v311_v38  ;;  %v314_v42 = vadd.f32 %v1283_v36, %v313_v40  ;;  %v1485_v43 = vpop.f32.mrb[3].mxu1  ;;  %v1696_v36 = vld [vmem:[#allocation7 + $0x1a8] sm:$0xff]   ;;  %v1314_v38 = vld [vmem:[#allocation8 + $0x4] ss:$0 sm:$0xff] }
 0x224   :  { %1715 = vpow2.f32 %v1292_v41  ;;  %v1293_v44 = vmul.f32 -1.442695, %v314_v42 }
 0x226   :  { %1717 = vpow2.f32 %v1293_v44 }
 0x22e   :  { %v1716_v45 = vpop.eup %1715 }
 0x22f   :  { %v323_v46 = vadd.f32 1.0, %v1716_v45 }
 0x230   :  { %v1718_v47 = vpop.eup %1717 }
 0x231   :  { %v324_v48 = vadd.f32 1.0, %v1718_v47  ;;  %1719 = vrcp.f32 %v323_v46 }
 0x233   :  { %1721 = vrcp.f32 %v324_v48 }
 0x23b   :  { %v1720_v49 = vpop.eup %1719 }
 0x23d   :  { %v1722_v50 = vpop.eup %1721 }
 0x23e   :  { %v329_v51 = vpack.c.bf16 %v1722_v50, %v1720_v49 }
 0x240   :  { %1503 = vmatmul.mubr.bf16.vlgmr.msra.gmra.mrb[4].mxu0 %v329_v51 }
 0x241   :  { %1542 = vmatprep.mubr.msk.bf16.mxu0 %vm1958_vm0, %v1957_v0  ;;  %1527 = vmatpush3.bf16.msra.mxu0 %v1668_v53 }
 0x242   :  { %1528 = vmatprep.subr.bf16.mxu0 %v1957_v0 }
 0x245   :  { %1529 = vmatpush3.bf16.msra.mxu0 %v1670_v55  ;;  %v693_v55 = vld [vmem:[#allocation5] sm:$0xff] }
 0x246   :  { %1530 = vmatprep.subr.bf16.mxu0 %v1957_v0 }
 0x249   :  { %1531 = vmatpush3.bf16.msra.mxu0 %v1672_v57  ;;  %v694_v57 = vld [vmem:[#allocation5 + $0x8] sm:$0xff] }
 0x24a   :  { %1532 = vmatprep.subr.bf16.mxu0 %v1957_v0 }
 0x24d   :  { %1533 = vmatpush3.bf16.msra.mxu0 %v1674_v59 }
 0x24e   :  { %1534 = vmatprep.subr.bf16.mxu0 %v1957_v0 }
 0x251   :  { %1535 = vmatpush3.bf16.msra.mxu0 %v1676_v61 }
 0x252   :  { %1536 = vmatprep.subr.bf16.mxu0 %v1957_v0 }
 0x255   :  { %1537 = vmatpush3.bf16.msra.mxu0 %v1678_v63 }
 0x256   :  { %1538 = vmatprep.subr.bf16.mxu0 %v1957_v0 }
 0x259   :  { %1539 = vmatpush3.bf16.msra.mxu0 %v1680_v2  ;;  %v1698_v2 = vld [vmem:[#allocation7 + $0x1b8] sm:$0xff]  }
 0x25a   :  { %1540 = vmatprep.subr.bf16.mxu0 %v1957_v0 }
 0x25d   :  { %1541 = vmatpush3.bf16.msra.mxu0 %v1682_v4 }
 0x25e   :  { %1566 = vmatprep.subr.bf16.mxu0 %v1957_v0 }
 0x313   :  { %v437_v6 = vpop.f32.mrb[4].mxu0 }
 0x314   :  { %v438_v7 = vadd.f32 %v1294_v5, %v437_v6  ;;  %v1504_v8 = vpop.f32.mrb[5].mxu0 }
 0x315   :  { %v440_v9 = vpop.f32.mrb[6].mxu0 }
 0x316   :  { %v1303_v10 = vmul.f32 -1.442695, %v438_v7  ;;  %v441_v11 = vadd.f32 %v1294_v5, %v440_v9  ;;  %v1505_v12 = vpop.f32.mrb[7].mxu0 }
 0x318   :  { %1723 = vpow2.f32 %v1303_v10  ;;  %v1304_v13 = vmul.f32 -1.442695, %v441_v11 }
 0x31a   :  { %1725 = vpow2.f32 %v1304_v13  ;;  %v1699_v13 = vld [vmem:[#allocation7 + $0x1c0] sm:$0xff]  }
 0x322   :  { %v1724_v14 = vpop.eup %1723 }
 0x323   :  { %v450_v15 = vadd.f32 1.0, %v1724_v14  ;;  %v1700_v14 = vld [vmem:[#allocation7 + $0x1c8] sm:$0xff]  }
 0x324   :  { %v1726_v16 = vpop.eup %1725 }
 0x325   :  { %1727 = vrcp.f32 %v450_v15  ;;  %v451_v17 = vadd.f32 1.0, %v1726_v16  ;;  %v1701_v15 = vld [vmem:[#allocation7 + $0x1d0] sm:$0xff]   ;;  %v1702_v16 = vld [vmem:[#allocation7 + $0x1d8] sm:$0xff]  }
 0x327   :  { %1729 = vrcp.f32 %v451_v17  ;;  %v1703_v17 = vld [vmem:[#allocation7 + $0x1e0] sm:$0xff]  }
 0x32f   :  { %v1728_v18 = vpop.eup %1727 }
 0x330   :  { %v456_v20 = vmul.f32 %v1728_v18, %v438_v7  ;;  %v1704_v18 = vld [vmem:[#allocation7 + $0x1e8] sm:$0xff]  }
 0x331   :  { %v1730_v19 = vpop.eup %1729 }
 0x332   :  { %v457_v21 = vmul.f32 %v1730_v19, %v441_v11  ;;  %v1705_v19 = vld [vmem:[#allocation7 + $0x1f0] sm:$0xff]  }
 0x334   :  { %v458_v23 = vpack.c.bf16 %v457_v21, %v456_v20  ;;  %v1706_v20 = vld [vmem:[#allocation7 + $0x1f8] sm:$0xff]   ;;  %v1332_v21 = vld [vmem:[#allocation8 + $0x6] ss:$0 sm:$0xff] }
 0x336   :  { %1523 = vmatmul.mubr.bf16.vlgmr.msra.gmra.mrb[4].mxu1 %v458_v23  ;;  %1543 = vmatmul.mubr.bf16.vlgmr.msra.gmra.mrb[8].mxu0 %v458_v23 }
 0x337   :  { %1547 = vmatpush3.bf16.msra.mxu1 %v1683_v22  ;;  %1562 = vmatprep.mubr.msk.bf16.mxu1 %vm1958_vm0, %v1957_v0 }
 0x338   :  { %1548 = vmatprep.subr.bf16.mxu1 %v1957_v0  ;;  %1582 = vmatprep.mubr.msk.bf16.mxu0 %vm1958_vm0, %v1957_v0 }
 0x339   :  { %1567 = vmatpush3.bf16.msra.mxu0 %v1691_v31 }
 0x33a   :  { %1568 = vmatprep.subr.bf16.mxu0 %v1957_v0 }
 0x33b   :  { %1549 = vmatpush3.bf16.msra.mxu1 %v1684_v24 }
 0x33c   :  { %1550 = vmatprep.subr.bf16.mxu1 %v1957_v0 }
 0x33d   :  { %1569 = vmatpush3.bf16.msra.mxu0 %v1692_v32 }
 0x33e   :  { %1570 = vmatprep.subr.bf16.mxu0 %v1957_v0 }
 0x33f   :  { %1551 = vmatpush3.bf16.msra.mxu1 %v1685_v25 }
 0x340   :  { %1552 = vmatprep.subr.bf16.mxu1 %v1957_v0 }
 0x341   :  { %1571 = vmatpush3.bf16.msra.mxu0 %v1693_v33 }
 0x342   :  { %1572 = vmatprep.subr.bf16.mxu0 %v1957_v0 }
 0x343   :  { %1553 = vmatpush3.bf16.msra.mxu1 %v1686_v26 }
 0x344   :  { %1554 = vmatprep.subr.bf16.mxu1 %v1957_v0 }
 0x345   :  { %1573 = vmatpush3.bf16.msra.mxu0 %v1694_v34 }
 0x346   :  { %1574 = vmatprep.subr.bf16.mxu0 %v1957_v0 }
 0x347   :  { %1555 = vmatpush3.bf16.msra.mxu1 %v1687_v27 }
 0x348   :  { %1556 = vmatprep.subr.bf16.mxu1 %v1957_v0 }
 0x349   :  { %1575 = vmatpush3.bf16.msra.mxu0 %v1695_v35 }
 0x34a   :  { %1576 = vmatprep.subr.bf16.mxu0 %v1957_v0 }
 0x34b   :  { %1557 = vmatpush3.bf16.msra.mxu1 %v1688_v28 }
 0x34c   :  { %1558 = vmatprep.subr.bf16.mxu1 %v1957_v0 }
 0x34d   :  { %1577 = vmatpush3.bf16.msra.mxu0 %v1696_v36 }
 0x34e   :  { %1578 = vmatprep.subr.bf16.mxu0 %v1957_v0 }
 0x34f   :  { %1559 = vmatpush3.bf16.msra.mxu1 %v1689_v29 }
 0x350   :  { %1560 = vmatprep.subr.bf16.mxu1 %v1957_v0 }
 0x351   :  { %1579 = vmatpush3.bf16.msra.mxu0 %v1697_v1 }
 0x352   :  { %1580 = vmatprep.subr.bf16.mxu0 %v1957_v0 }
 0x353   :  { %1561 = vmatpush3.bf16.msra.mxu1 %v1690_v30 }
 0x354   :  { %1586 = vmatprep.subr.bf16.mxu1 %v1957_v0 }
 0x355   :  { %1581 = vmatpush3.bf16.msra.mxu0 %v1698_v2 }
 0x356   :  { %1606 = vmatprep.subr.bf16.mxu0 %v1957_v0 }
 0x409   :  { %v566_v39 = vpop.f32.mrb[4].mxu1  ;;  %v680_v40 = vpop.f32.mrb[8].mxu0 }
 0x40a   :  { %v567_v41 = vadd.f32 %v1305_v37, %v566_v39  ;;  %v681_v42 = vadd.f32 %v1314_v38, %v680_v40  ;;  %v1524_v43 = vpop.f32.mrb[5].mxu1  ;;  %v1544_v44 = vpop.f32.mrb[9].mxu0  ;;  %v1709_v39 = vld [vmem:[#allocation7 + $0x210] sm:$0xff]   ;;  %v1710_v40 = vld [vmem:[#allocation7 + $0x218] sm:$0xff]  }
 0x40b   :  { %v569_v45 = vpop.f32.mrb[6].mxu1  ;;  %v683_v46 = vpop.f32.mrb[10].mxu0  ;;  %v1713_v43 = vld [vmem:[#allocation7 + $0x230] sm:$0xff]   ;;  %v1714_v44 = vld [vmem:[#allocation7 + $0x238] sm:$0xff]  }
 0x40c   :  { %1203 = vst [vmem:[#allocation13] sm:$0xff] %v567_v41  ;;  %v687_v47 = vmul.f32 0.5, %v681_v42  ;;  %1205 = vst [vmem:[#allocation14] sm:$0xff] %v681_v42  ;;  %v570_v48 = vadd.f32 %v1305_v37, %v569_v45  ;;  %v684_v49 = vadd.f32 %v1314_v38, %v683_v46  ;;  %v1525_v50 = vpop.f32.mrb[7].mxu1  ;;  %v1545_v51 = vpop.f32.mrb[11].mxu0  ;;  %v1707_v37 = vld [vmem:[#allocation7 + $0x200] sm:$0xff]  }
 0x40d   :  { %v1708_v38 = vld [vmem:[#allocation7 + $0x208] sm:$0xff]   ;;  %v1343_v45 = vld [vmem:[#allocation8 + $0x7] ss:$0 sm:$0xff] }
 0x40e   :  { %v689_v52 = vmul.f32 1.442695, %v687_v47  ;;  %1204 = vst [vmem:[#allocation13 + $0x8] sm:$0xff] %v570_v48  ;;  %v688_v53 = vmul.f32 0.5, %v684_v49  ;;  %1206 = vst [vmem:[#allocation14 + $0x8] sm:$0xff] %v684_v49  ;;  %v1712_v42 = vld [vmem:[#allocation7 + $0x228] sm:$0xff]  }
 0x410   :  { %1731 = vpow2.f32 %v689_v52  ;;  %v691_v54 = vmul.f32 1.442695, %v688_v53 }
 0x412   :  { %1733 = vpow2.f32 %v691_v54 }
 0x41a   :  { %v1732_v56 = vpop.eup %1731 }
 0x41b   :  { %v695_v58 = vmul.f32 %v1732_v56, %v693_v55 }
 0x41c   :  { %v1734_v59 = vpop.eup %1733 }
 0x41d   :  { %v696_v60 = vmul.f32 %v1734_v59, %v694_v57  ;;  %v697_v61 = vadd.f32 %v695_v58, %v567_v41  ;;  %v1711_v41 = vld [vmem:[#allocation7 + $0x220] sm:$0xff]  }
 0x41f   :  { %v698_v62 = vadd.f32 %v696_v60, %v570_v48  ;;  %1201 = vst [vmem:[#allocation11] sm:$0xff] %v697_v61 }
 0x421   :  { %v699_v63 = vpack.c.bf16 %v698_v62, %v697_v61  ;;  %1202 = vst [vmem:[#allocation11 + $0x8] sm:$0xff] %v698_v62 }
 0x423   :  { %1563 = vmatmul.mubr.bf16.vlgmr.msra.gmra.mrb[8].mxu1 %v699_v63 }
 0x424   :  { %1602 = vmatprep.mubr.msk.bf16.mxu1 %vm1958_vm0, %v1957_v0  ;;  %1587 = vmatpush3.bf16.msra.mxu1 %v1699_v13 }
 0x425   :  { %1588 = vmatprep.subr.bf16.mxu1 %v1957_v0 }
 0x428   :  { %1589 = vmatpush3.bf16.msra.mxu1 %v1700_v14 }
 0x429   :  { %1590 = vmatprep.subr.bf16.mxu1 %v1957_v0 }
 0x42c   :  { %1591 = vmatpush3.bf16.msra.mxu1 %v1701_v15 }
 0x42d   :  { %1592 = vmatprep.subr.bf16.mxu1 %v1957_v0 }
 0x430   :  { %1593 = vmatpush3.bf16.msra.mxu1 %v1702_v16 }
 0x431   :  { %1594 = vmatprep.subr.bf16.mxu1 %v1957_v0 }
 0x434   :  { %1595 = vmatpush3.bf16.msra.mxu1 %v1703_v17 }
 0x435   :  { %1596 = vmatprep.subr.bf16.mxu1 %v1957_v0 }
 0x438   :  { %1597 = vmatpush3.bf16.msra.mxu1 %v1704_v18 }
 0x439   :  { %1598 = vmatprep.subr.bf16.mxu1 %v1957_v0 }
 0x43c   :  { %1599 = vmatpush3.bf16.msra.mxu1 %v1705_v19 }
 0x43d   :  { %1600 = vmatprep.subr.bf16.mxu1 %v1957_v0 }
 0x440   :  { %1601 = vmatpush3.bf16.msra.mxu1 %v1706_v20 }
 0x4f6   :  { %v807_v4 = vpop.f32.mrb[8].mxu1 }
 0x4f7   :  { %v808_v5 = vadd.f32 %v1323_v3, %v807_v4  ;;  %v1564_v6 = vpop.f32.mrb[9].mxu1 }
 0x4f8   :  { %v810_v7 = vpop.f32.mrb[10].mxu1 }
 0x4f9   :  { %v811_v8 = vadd.f32 %v1323_v3, %v810_v7  ;;  %v1565_v9 = vpop.f32.mrb[11].mxu1  ;;  %v814_v10 = vmax.f32 %v808_v5, 0.0 }
 0x4fb   :  { %v815_v11 = vmax.f32 %v811_v8, 0.0 }
 0x4fd   :  { %v816_v12 = vpack.c.bf16 %v815_v11, %v814_v10 }
 0x4ff   :  { %1583 = vmatmul.mubr.bf16.vlgmr.msra.gmra.mrb[12].mxu0 %v816_v12 }
 0x500   :  { %1622 = vmatprep.mubr.msk.bf16.mxu0 %vm1958_vm0, %v1957_v0  ;;  %1607 = vmatpush3.bf16.msra.mxu0 %v1707_v37 }
 0x501   :  { %1608 = vmatprep.subr.bf16.mxu0 %v1957_v0 }
 0x504   :  { %1609 = vmatpush3.bf16.msra.mxu0 %v1708_v38 }
 0x505   :  { %1610 = vmatprep.subr.bf16.mxu0 %v1957_v0 }
 0x508   :  { %1611 = vmatpush3.bf16.msra.mxu0 %v1709_v39 }
 0x509   :  { %1612 = vmatprep.subr.bf16.mxu0 %v1957_v0 }
 0x50c   :  { %1613 = vmatpush3.bf16.msra.mxu0 %v1710_v40 }
 0x50d   :  { %1614 = vmatprep.subr.bf16.mxu0 %v1957_v0 }
 0x510   :  { %1615 = vmatpush3.bf16.msra.mxu0 %v1711_v41 }
 0x511   :  { %1616 = vmatprep.subr.bf16.mxu0 %v1957_v0 }
 0x514   :  { %1617 = vmatpush3.bf16.msra.mxu0 %v1712_v42 }
 0x515   :  { %1618 = vmatprep.subr.bf16.mxu0 %v1957_v0 }
 0x518   :  { %1619 = vmatpush3.bf16.msra.mxu0 %v1713_v43 }
 0x519   :  { %1620 = vmatprep.subr.bf16.mxu0 %v1957_v0 }
 0x51c   :  { %1621 = vmatpush3.bf16.msra.mxu0 %v1714_v44 }
 0x5d2   :  { %v924_v22 = vpop.f32.mrb[12].mxu0 }
 0x5d3   :  { %v925_v23 = vadd.f32 %v1332_v21, %v924_v22  ;;  %v1584_v24 = vpop.f32.mrb[13].mxu0 }
 0x5d4   :  { %v927_v25 = vpop.f32.mrb[14].mxu0 }
 0x5d5   :  { %v1341_v26 = vmul.f32 -1.442695, %v925_v23  ;;  %v928_v27 = vadd.f32 %v1332_v21, %v927_v25  ;;  %v1585_v28 = vpop.f32.mrb[15].mxu0 }
 0x5d7   :  { %1735 = vpow2.f32 %v1341_v26  ;;  %v1342_v29 = vmul.f32 -1.442695, %v928_v27 }
 0x5d9   :  { %1737 = vpow2.f32 %v1342_v29 }
 0x5e1   :  { %v1736_v30 = vpop.eup %1735 }
 0x5e2   :  { %v937_v31 = vadd.f32 1.0, %v1736_v30 }
 0x5e3   :  { %v1738_v32 = vpop.eup %1737 }
 0x5e4   :  { %v938_v33 = vadd.f32 1.0, %v1738_v32  ;;  %1739 = vrcp.f32 %v937_v31 }
 0x5e6   :  { %1741 = vrcp.f32 %v938_v33 }
 0x5ee   :  { %v1740_v34 = vpop.eup %1739 }
 0x5f0   :  { %v1742_v35 = vpop.eup %1741 }
 0x5f1   :  { %v943_v36 = vpack.c.bf16 %v1742_v35, %v1740_v34 }
 0x5f3   :  { %1603 = vmatmul.mubr.bf16.vlgmr.msra.gmra.mrb[12].mxu1 %v943_v36 }
 0x6c6   :  { %v1051_v46 = vpop.f32.mrb[12].mxu1 }
 0x6c7   :  { %v1052_v47 = vadd.f32 %v1343_v45, %v1051_v46  ;;  %v1604_v48 = vpop.f32.mrb[13].mxu1 }
 0x6c8   :  { %v1054_v49 = vpop.f32.mrb[14].mxu1 }
 0x6c9   :  { %v1352_v50 = vmul.f32 -1.442695, %v1052_v47  ;;  %v1055_v51 = vadd.f32 %v1343_v45, %v1054_v49  ;;  %v1605_v52 = vpop.f32.mrb[15].mxu1 }
 0x6cb   :  { %1743 = vpow2.f32 %v1352_v50  ;;  %v1353_v53 = vmul.f32 -1.442695, %v1055_v51 }
 0x6cd   :  { %1745 = vpow2.f32 %v1353_v53 }
 0x6d5   :  { %v1744_v54 = vpop.eup %1743 }
 0x6d6   :  { %v1064_v55 = vadd.f32 1.0, %v1744_v54 }
 0x6d7   :  { %v1746_v56 = vpop.eup %1745 }
 0x6d8   :  { %1747 = vrcp.f32 %v1064_v55  ;;  %v1065_v57 = vadd.f32 1.0, %v1746_v56 }
 0x6da   :  { %1749 = vrcp.f32 %v1065_v57 }
 0x6e2   :  { %v1748_v0 = vpop.eup %1747 }
 0x6e3   :  { %v1070_v59 = vmul.f32 %v1748_v0, %v1052_v47 }
 0x6e4   :  { %v1750_v58 = vpop.eup %1749 }
 0x6e5   :  { %v1071_v60 = vmul.f32 %v1750_v58, %v1055_v51 }
 0x6e7   :  { %v1072_v61 = vpack.c.bf16 %v1071_v60, %v1070_v59 }
 0x6e9   :  { %1623 = vmatmul.mubr.bf16.vlgmr.msra.gmra.mrb[16].mxu0 %v1072_v61 }
 0x6ea   :  { %1858 = shalt.err (!%p1855_p8)
}
 0x6eb   :  { %s1859_s14 = scalar_lea.hbm %s2217_s5, 256 }
 0x6ec   :  { %p1860_p9 = scmp.ne.s32.totalorder %s2217_s5, %s1859_s14  ;;  %p1863_p10 = scmp.lt.u32.totalorder %s1859_s14, %s2217_s5 }
 0x6ee   :  { %p1865_p11 = pnand %p1863_p10, %p1860_p9 }
 0x6f0   :  { %1868 = shalt.err (!%p1865_p11)
}
 0x6f1   :  { %1230 = dma.vmem_to_hbm [thread:$0]  %s1225_s8, 256, %s2217_s5, [#allocation12], %s1948_s11, %s1948_s11, %s1949_s12  }
 0x6f2   :  { %s1960_s20 = smov [#allocation13]   ;;  %s1961_s22 = smov [#allocation14]  }
 0x6f3   :  { %s1236_s21 = sshll.u32 %s1960_s20, 4  ;;  %s1248_s23 = sshll.u32 %s1961_s22, 4  ;;  %s1237_s21 = int_to_ptr.vmem [resolvable:$true] %s1236_s21  ;;  %s1249_s23 = int_to_ptr.vmem [resolvable:$true] %s1248_s23 }
 0x6f4   :  { %s1869_s24 = scalar_lea.vmem %s1237_s21, 256  ;;  %p1874_p13 = scmp.lt.s32.totalorder %s1237_s21, %s1237_s21 }
 0x6f5   :  { %p1870_p12 = scmp.ne.s32.totalorder %s1237_s21, %s1869_s24  ;;  %p1875_p0 = scmp.lt.s32.totalorder %s1869_s24, %s1869_s24 }
 0x6f7   :  { %p1876_p1 = por %p1875_p0, %p1874_p13 }
 0x6f9   :  { %p1877_p2 = pnand %p1876_p1, %p1870_p12 }
 0x6fb   :  { %1880 = shalt.err (!%p1877_p2)
}
 0x6fc   :  { %s1881_s28 = scalar_lea.hbm %s2218_s6, 256 }
 0x6fd   :  { %p1882_p3 = scmp.ne.s32.totalorder %s2218_s6, %s1881_s28  ;;  %p1885_p4 = scmp.lt.u32.totalorder %s1881_s28, %s2218_s6 }
 0x6ff   :  { %p1887_p5 = pnand %p1885_p4, %p1882_p3 }
 0x701   :  { %1890 = shalt.err (!%p1887_p5)
}
 0x702   :  { %1242 = dma.vmem_to_hbm [thread:$0]  %s1237_s21, 256, %s2218_s6, [#allocation12], %s1948_s11, %s1948_s11, %s1949_s12  }
 0x703   :  { %s1891_s3 = scalar_lea.vmem %s1249_s23, 256  ;;  %p1896_p7 = scmp.lt.s32.totalorder %s1249_s23, %s1249_s23 }
 0x704   :  { %p1892_p6 = scmp.ne.s32.totalorder %s1249_s23, %s1891_s3  ;;  %p1897_p8 = scmp.lt.s32.totalorder %s1891_s3, %s1891_s3 }
 0x706   :  { %p1898_p9 = por %p1897_p8, %p1896_p7 }
 0x708   :  { %p1899_p10 = pnand %p1898_p9, %p1892_p6 }
 0x70a   :  { %1902 = shalt.err (!%p1899_p10)
}
 0x70b   :  { %s1903_s10 = scalar_lea.hbm %s2219_s7, 256 }
 0x70c   :  { %p1904_p11 = scmp.ne.s32.totalorder %s2219_s7, %s1903_s10  ;;  %p1907_p12 = scmp.lt.u32.totalorder %s1903_s10, %s2219_s7 }
 0x70e   :  { %p1909_p13 = pnand %p1907_p12, %p1904_p11 }
 0x710   :  { %1912 = shalt.err (!%p1909_p13)
}
 0x711   :  { %1254 = dma.vmem_to_hbm [thread:$0]  %s1249_s23, 256, %s2219_s7, [#allocation15], %s1948_s11, %s1948_s11, %s1949_s12   ;;  %v1354_v62 = vld [vmem:[#allocation8 + $0x8] ss:$0 sm:$0xff] }
 0x712   :  { %s1962_s0 = smov [#allocation10]  }
 0x713   :  { %s1212_s16 = sshll.u32 %s1962_s0, 4  ;;  %s1213_s16 = int_to_ptr.vmem [resolvable:$true] %s1212_s16 }
 0x714   :  { %s1913_s7 = scalar_lea.vmem %s1213_s16, 256  ;;  %p1918_p1 = scmp.lt.s32.totalorder %s1213_s16, %s1213_s16 }
 0x715   :  { %p1914_p0 = scmp.ne.s32.totalorder %s1213_s16, %s1913_s7  ;;  %p1919_p2 = scmp.lt.s32.totalorder %s1913_s7, %s1913_s7 }
 0x717   :  { %p1920_p3 = por %p1919_p2, %p1918_p1 }
 0x719   :  { %p1921_p4 = pnand %p1920_p3, %p1914_p0 }
 0x7bc   :  { %v1180_v63 = vpop.f32.mrb[16].mxu0 }
 0x7bd   :  { %v1181_v1 = vadd.f32 %v1354_v62, %v1180_v63  ;;  %v1624_v2 = vpop.f32.mrb[17].mxu0 }
 0x7be   :  { %v1183_v3 = vpop.f32.mrb[18].mxu0 }
 0x7bf   :  { %v1363_v4 = vmul.f32 -1.442695, %v1181_v1  ;;  %v1184_v5 = vadd.f32 %v1354_v62, %v1183_v3  ;;  %v1625_v6 = vpop.f32.mrb[19].mxu0 }
 0x7c1   :  { %1751 = vpow2.f32 %v1363_v4  ;;  %v1364_v7 = vmul.f32 -1.442695, %v1184_v5 }
 0x7c3   :  { %1753 = vpow2.f32 %v1364_v7 }
 0x7cb   :  { %v1752_v8 = vpop.eup %1751 }
 0x7cc   :  { %v1193_v9 = vadd.f32 1.0, %v1752_v8 }
 0x7cd   :  { %v1754_v10 = vpop.eup %1753 }
 0x7ce   :  { %1755 = vrcp.f32 %v1193_v9  ;;  %v1194_v11 = vadd.f32 1.0, %v1754_v10 }
 0x7d0   :  { %1757 = vrcp.f32 %v1194_v11 }
 0x7d8   :  { %v1756_v12 = vpop.eup %1755 }
 0x7d9   :  { %1199 = vst [vmem:[#allocation10] sm:$0xff] %v1756_v12 }
 0x7da   :  { %v1758_v13 = vpop.eup %1757 }
 0x7db   :  { %1200 = vst [vmem:[#allocation10 + $0x8] sm:$0xff] %v1758_v13 }
 0x7dc   :  { %1924 = shalt.err (!%p1921_p4)
}
 0x7dd   :  { %s1925_s21 = scalar_lea.hbm %s2216_s4, 256 }
 0x7de   :  { %p1926_p5 = scmp.ne.s32.totalorder %s2216_s4, %s1925_s21  ;;  %p1929_p6 = scmp.lt.u32.totalorder %s1925_s21, %s2216_s4 }
 0x7e0   :  { %p1931_p7 = pnand %p1929_p6, %p1926_p5 }
 0x7e2   :  { %1934 = shalt.err (!%p1931_p7)
}
 0x7e3   :  { %1218 = dma.vmem_to_hbm [thread:$0]  %s1213_s16, 256, %s2216_s4, [#allocation4], %s1948_s11, %s1948_s11, %s1949_s12  }
 0x7e4   :  { %1941 = dma.done.wait [#allocation4], 256  }
 0x7e5   :  { %1942 = vsyncadd [#allocation4], 4294967040 }
 0x7e6   :  { %1943 = dma.done.wait [#allocation12], 512  }
 0x7e7   :  { %1944 = vsyncadd [#allocation12], 4294966784 }
 0x7e8   :  { %1945 = dma.done.wait [#allocation15], 256  }
 0x7e9   :  { %1946 = vsyncadd [#allocation15], 4294967040 }
 0x7ea   :  { %1267 = vsyncpa [#allocation3], 1 }
 0x7eb   :  { %1268 = vsyncpa [#allocation6], 1 }
 0x7ec   :  { %1269 = vsyncpa [#allocation9], 1 }
 0x7ed   :  { %1270 = vsyncpa [#allocation4], 1 }
 0x7ee   :  { %1271 = vsyncpa [#allocation12], 1 }
 0x7ef   :  { %1272 = vsyncpa [#allocation15], 1 }

</bundles_post_ra>
